<compile_context>
chip_gen: v7x
topology: tpu7x:2x2x1
jax: 0.10.0
libtpu: 0.0.40
codegen_flags: <defaults>
</compile_context>

<pallas_src>
import math

import jax
import jax.numpy as jnp
from jax.experimental import pallas as pl
from jax.experimental.pallas import tpu as pltpu

_INV_SQRT2 = 0.7071067811865476
_MM_DTYPE = jnp.bfloat16          # MXU operand dtype; accumulation stays f32.


def _round_up(n, m):
    return ((n + m - 1) // m) * m


def _erf_poly(x):
    # Abramowitz & Stegun 7.1.26 polynomial erf, |abs err| < 1.5e-7.
    # Uses only exp (EUP) + VPU ops -> always lowers in Mosaic.
    a1, a2, a3, a4, a5 = (0.254829592, -0.284496736, 1.421413741,
                          -1.453152027, 1.061405429)
    p = 0.3275911
    ax = jnp.abs(x)
    t = 1.0 / (1.0 + p * ax)
    poly = ((((a5 * t + a4) * t + a3) * t + a2) * t + a1) * t
    y = 1.0 - poly * jnp.exp(-ax * ax)
    return jnp.where(x >= 0.0, y, -y)


def _gelu_exact(x):
    # PyTorch F.gelu default (erf-based), kept in f32.
    return 0.5 * x * (1.0 + _erf_poly(x * _INV_SQRT2))


# ---------------------------------------------------------------------------
# Kernel 1 (fused front-end): embedding scaling + alert-axis reduction, NaN
# row handling, input_fc Linear and the eval-mode row mask, one pass over
# row tiles of the flattened (B*T) axis.
# ---------------------------------------------------------------------------
def _frontend_kernel(emb_ref, sc_ref, bm_ref, w_ref, b_ref, out_ref):
    e = emb_ref[...]                                     # (TM, A, E) f32
    s = sc_ref[...]                                      # (TM, A, 1) f32
    alerts = jnp.sum(e * s, axis=1)                      # (TM, E)    f32

    nanmap = jnp.isnan(alerts)                           # (TM, E) bool
    alerts = jnp.where(nanmap, 0.0, alerts)              # keep matmul finite
    bad = jnp.max(nanmap.astype(jnp.float32), axis=-1, keepdims=True)  # (TM, 1)
    keep = bm_ref[...] * (1.0 - bad)                     # row mask & nan mask

    y = jnp.dot(alerts.astype(w_ref.dtype), w_ref[...],
                preferred_element_type=jnp.float32) + b_ref[...]
    out_ref[...] = y * keep


def frontend_fused(emb_rows, scale_rows, bm_rows, fc_w, fc_b):
    N, A, E = emb_rows.shape
    H = fc_w.shape[1]

    TM = min(512, _round_up(N, 8))                       # row tile, multiple of 8
    Npad = _round_up(N, TM)
    if Npad > N:
        pad = Npad - N
        emb_rows = jnp.pad(emb_rows, ((0, pad), (0, 0), (0, 0)))
        scale_rows = jnp.pad(scale_rows, ((0, pad), (0, 0), (0, 0)))
        bm_rows = jnp.pad(bm_rows, ((0, pad), (0, 0)))

    out = pl.pallas_call(
        _frontend_kernel,
        out_shape=jax.ShapeDtypeStruct((Npad, H), jnp.float32),
        grid=(Npad // TM,),
        in_specs=[
            pl.BlockSpec((TM, A, E), lambda i: (i, 0, 0)),
            pl.BlockSpec((TM, A, 1), lambda i: (i, 0, 0)),
            pl.BlockSpec((TM, 1), lambda i: (i, 0)),
            pl.BlockSpec((E, H), lambda i: (0, 0)),
            pl.BlockSpec((1, H), lambda i: (0, 0)),
        ],
        out_specs=pl.BlockSpec((TM, H), lambda i: (i, 0)),
        compiler_params=pltpu.CompilerParams(
            dimension_semantics=("parallel",)),
    )(emb_rows, scale_rows, bm_rows,
      fc_w.astype(_MM_DTYPE), fc_b.reshape(1, H).astype(jnp.float32))
    return out[:N]


# ---------------------------------------------------------------------------
# Kernel 2 (fused DilatedConvEncoder): all ConvBlocks in one pallas_call.
#   per block:  residual = x (or 1x1 projector(x))
#               h  = SamePadConv(gelu(x), dilation=d)   (kernel size 3)
#               h2 = SamePadConv(gelu(h), dilation=d)
#               x  = h2 + residual
# Same padding is realised by one VMEM halo scratch; only the fringe rows are
# zeroed (once per grid step, PAD is a multiple of 8 so centre stores are
# sublane-aligned); each dilated conv is 3 shifted (BB*T, Cin) @ (Cin, Cout)
# MXU matmuls with bf16 operands / f32 accumulation.
# ---------------------------------------------------------------------------
def _make_conv_stack_kernel(T, PAD, meta):
    """meta: static tuple of (dilation, has_projector) per ConvBlock."""
    n_w = sum(6 if hp else 4 for _, hp in meta)

    def kernel(*refs):
        x_ref = refs[0]
        out_ref = refs[1 + n_w]
        buf = refs[2 + n_w]                   # (BB, T + 2*PAD, Cmax) f32 scratch
        BB = x_ref.shape[0]
        Tp = buf.shape[1]
        Cm = buf.shape[2]

        # Zero only the halo fringes; centre rows [PAD, PAD+T) are always
        # rewritten before they are read, so the fringes stay zero for every
        # block / dilation of the stack (same-padding semantics).
        buf[:, :PAD, :] = jnp.zeros((BB, PAD, Cm), jnp.float32)
        buf[:, PAD + T:Tp, :] = jnp.zeros((BB, Tp - PAD - T, Cm), jnp.float32)

        cur = x_ref[...]                      # (BB, T, C0) f32, resident in VMEM
        idx = 1
        for d, has_proj in meta:
            if has_proj:
                w1, b1, w2, b2, pw, pb = refs[idx:idx + 6]
                idx += 6
            else:
                w1, b1, w2, b2 = refs[idx:idx + 4]
                idx += 4
            c_in = cur.shape[2]
            c_out = b1.shape[1]
            mmdt = w1.dtype

            x2 = cur.reshape(BB * T, c_in)
            if has_proj:                      # 1x1 Conv1d projector on the residual
                res = jnp.dot(x2.astype(mmdt), pw[...],
                              preferred_element_type=jnp.float32) + pb[...]
            else:
                res = x2

            # ---- conv1 on gelu(block input) ------------------------------
            buf[:, PAD:PAD + T, :c_in] = _gelu_exact(cur)
            acc = jnp.zeros((BB * T, c_out), jnp.float32)
            for k in range(3):
                off = PAD + (k - 1) * d
                win = buf[:, off:off + T, :c_in].reshape(BB * T, c_in)
                acc = acc + jnp.dot(win.astype(mmdt), w1[k],
                                    preferred_element_type=jnp.float32)
            h1 = _gelu_exact(acc + b1[...])   # (BB*T, c_out) f32

            # ---- conv2 on gelu(conv1 output) -----------------------------
            buf[:, PAD:PAD + T, :c_out] = h1.reshape(BB, T, c_out)
            acc2 = jnp.zeros((BB * T, c_out), jnp.float32)
            for k in range(3):
                off = PAD + (k - 1) * d
                win = buf[:, off:off + T, :c_out].reshape(BB * T, c_out)
                acc2 = acc2 + jnp.dot(win.astype(mmdt), w2[k],
                                      preferred_element_type=jnp.float32)

            cur = (acc2 + b2[...] + res).reshape(BB, T, c_out)

        out_ref[...] = cur

    return kernel


def _pick_batch_block(B, T, c_max, n_blocks):
    # Rough per-batch-element f32 VMEM footprint of the fused stack
    # (halo scratch + a handful of live intermediates per block).
    per_b = 4 * T * c_max * (6 + 2 * n_blocks) + 4 * (T + 16) * c_max
    budget = 6 * 1024 * 1024                  # conservative (v7x: 64 MiB physical)
    bb = max(1, min(B, budget // max(per_b, 1)))
    while B % bb:                             # keep the grid exact
        bb -= 1
    return bb


def dilated_conv_stack(h, blocks, meta):
    """h: (B, T, C0) f32; blocks: list of weight dicts; meta: ((dil, has_proj), ...)."""
    B, T, c0 = h.shape
    assert T % 8 == 0, "T must be a multiple of 8 for the in-kernel reshapes"
    n_out = blocks[-1]["b2"].shape[0]
    c_max = c0
    for blk in blocks:
        c_max = max(c_max, blk["b1"].shape[0])
    max_d = max(d for d, _ in meta)
    PAD = _round_up(max(max_d, 8), 8)         # aligned centre stores
    Tp = T + 2 * PAD

    BB = _pick_batch_block(B, T, c_max, len(meta))

    inputs = [h]
    in_specs = [pl.BlockSpec((BB, T, c0), lambda b: (b, 0, 0))]
    for blk, (d, has_proj) in zip(blocks, meta):
        c_out = blk["b1"].shape[0]
        w1c = blk["w1"].astype(_MM_DTYPE)
        w2c = blk["w2"].astype(_MM_DTYPE)
        b1c = blk["b1"].reshape(1, c_out)
        b2c = blk["b2"].reshape(1, c_out)
        inputs += [w1c, b1c, w2c, b2c]
        in_specs += [
            pl.BlockSpec(w1c.shape, lambda b: (0, 0, 0)),
            pl.BlockSpec((1, c_out), lambda b: (0, 0)),
            pl.BlockSpec(w2c.shape, lambda b: (0, 0, 0)),
            pl.BlockSpec((1, c_out), lambda b: (0, 0)),
        ]
        if has_proj:
            pwc = blk["pw"].astype(_MM_DTYPE)
            pbc = blk["pb"].reshape(1, c_out)
            inputs += [pwc, pbc]
            in_specs += [pl.BlockSpec(pwc.shape, lambda b: (0, 0)),
                         pl.BlockSpec((1, c_out), lambda b: (0, 0))]

    return pl.pallas_call(
        _make_conv_stack_kernel(T, PAD, meta),
        out_shape=jax.ShapeDtypeStruct((B, T, n_out), jnp.float32),
        grid=(B // BB,),
        in_specs=in_specs,
        out_specs=pl.BlockSpec((BB, T, n_out), lambda b: (b, 0, 0)),
        scratch_shapes=[pltpu.VMEM((BB, Tp, c_max), jnp.float32)],
        compiler_params=pltpu.CompilerParams(
            dimension_semantics=("parallel",)),
    )(*inputs)


# ---------------------------------------------------------------------------
# Parameter init (deterministic, synthetic — matches module shapes).
# ---------------------------------------------------------------------------
def init_params(key, *, input_dims, output_dims, id_len, id_emb_dim,
                hidden_dims, depth):
    del input_dims  # the module overwrites self.input_dims with id_emb_dim
    keys = jax.random.split(key, 4 + 6 * (depth + 1))
    it = iter(range(len(keys)))

    emb = 0.1 * jax.random.normal(keys[next(it)], (id_len + 1, id_emb_dim),
                                  jnp.float32)
    emb = emb.at[0].set(0.0)                  # padding_idx=0 row zeroed at init

    fc_w = (1.0 / math.sqrt(id_emb_dim)) * jax.random.normal(
        keys[next(it)], (id_emb_dim, hidden_dims), jnp.float32)
    fc_b = 0.01 * jax.random.normal(keys[next(it)], (hidden_dims,), jnp.float32)

    channels = [hidden_dims] * depth + [output_dims]
    blocks = []
    for i, c_out in enumerate(channels):
        c_in = hidden_dims if i == 0 else channels[i - 1]
        final = (i == len(channels) - 1)
        has_proj = (c_in != c_out) or final
        sc1 = 1.0 / math.sqrt(3 * c_in)
        sc2 = 1.0 / math.sqrt(3 * c_out)
        blk = {
            "w1": sc1 * jax.random.normal(keys[next(it)], (3, c_in, c_out), jnp.float32),
            "b1": 0.01 * jax.random.normal(keys[next(it)], (c_out,), jnp.float32),
            "w2": sc2 * jax.random.normal(keys[next(it)], (3, c_out, c_out), jnp.float32),
            "b2": 0.01 * jax.random.normal(keys[next(it)], (c_out,), jnp.float32),
            "pw": None,
            "pb": None,
        }
        if has_proj:
            blk["pw"] = (1.0 / math.sqrt(c_in)) * jax.random.normal(
                keys[next(it)], (c_in, c_out), jnp.float32)
            blk["pb"] = 0.01 * jax.random.normal(keys[next(it)], (c_out,), jnp.float32)
        blocks.append(blk)

    return {"emb": emb, "fc_w": fc_w, "fc_b": fc_b, "blocks": blocks}


# ---------------------------------------------------------------------------
# Forward pass (eval-mode semantics of TSEncoder_a.forward).
# ---------------------------------------------------------------------------
def ts_encoder_a_forward(params, x, mask_mode="all_true"):
    # x: (B, T, A, F) f32; x[..., -1] holds integer alert-type ids.
    alerttype = x[..., -1].astype(jnp.int32)           # (B, T, A)
    others = x[..., :-1]                               # (B, T, A, F-1)

    # Embedding gather is data-dependent -> stays as XLA glue.
    emb = jnp.take(params["emb"], alerttype, axis=0)   # (B, T, A, E)
    B, T, A, E = emb.shape
    N = B * T

    # emb*o0 + emb*o1 == emb*(o0+o1); combine the scales (tiny XLA add) so the
    # kernel DMAs one (N, A, 1) stream instead of two (N, A) streams.
    scale = (others[..., 0] + others[..., 1])[..., None]   # (B, T, A, 1)

    if mask_mode == "all_true":
        bm = jnp.ones((B, T), jnp.float32)
    elif mask_mode == "all_false":
        bm = jnp.zeros((B, T), jnp.float32)
    elif mask_mode == "mask_last":
        bm = jnp.ones((B, T), jnp.float32).at[:, -1].set(0.0)
    else:
        # TODO(synk): 'binomial'/'continuous' masks use host-side numpy RNG.
        raise NotImplementedError(mask_mode)

    h = frontend_fused(
        emb.reshape(N, A, E),
        scale.reshape(N, A, 1),
        bm.reshape(N, 1),
        params["fc_w"], params["fc_b"],
    ).reshape(B, T, params["fc_w"].shape[1])

    meta = tuple((2 ** i, blk["pw"] is not None)
                 for i, blk in enumerate(params["blocks"]))
    y = dilated_conv_stack(h, params["blocks"], meta)
    # repr_dropout(p=0.1): identity at inference.
    return y                                           # (B, T, output_dims)


# ---------------------------------------------------------------------------
# Pure-JAX f32 reference (same eval-mode semantics) for a numerical check.
# ---------------------------------------------------------------------------
def _ref_same_pad_conv(x, w, b, d):
    T = x.shape[1]
    xp = jnp.pad(x, ((0, 0), (d, d), (0, 0)))
    out = b
    for k in range(3):
        out = out + jnp.matmul(xp[:, k * d:k * d + T, :], w[k])
    return out


def ts_encoder_a_reference(params, x, mask_mode="all_true"):
    alerttype = x[..., -1].astype(jnp.int32)
    others = x[..., :-1]
    e = jnp.take(params["emb"], alerttype, axis=0)
    ae = e * others[..., 0:1] + e * others[..., 1:2]
    alerts = jnp.sum(ae, axis=2)
    nan_mask = ~jnp.any(jnp.isnan(alerts), axis=-1)
    alerts = jnp.where(nan_mask[..., None], alerts, 0.0)
    h = jnp.matmul(alerts, params["fc_w"]) + params["fc_b"]
    B, T = h.shape[0], h.shape[1]
    if mask_mode == "all_true":
        base = jnp.ones((B, T), bool)
    elif mask_mode == "all_false":
        base = jnp.zeros((B, T), bool)
    elif mask_mode == "mask_last":
        base = jnp.ones((B, T), bool).at[:, -1].set(False)
    else:
        raise NotImplementedError(mask_mode)
    mask = jnp.logical_and(base, nan_mask)
    y = jnp.where(mask[..., None], h, 0.0)
    for i, blk in enumerate(params["blocks"]):
        d = 2 ** i
        res = y if blk["pw"] is None else jnp.matmul(y, blk["pw"]) + blk["pb"]
        g1 = jax.nn.gelu(y, approximate=False)
        t = _ref_same_pad_conv(g1, blk["w1"], blk["b1"], d)
        g2 = jax.nn.gelu(t, approximate=False)
        t = _ref_same_pad_conv(g2, blk["w2"], blk["b2"], d)
        y = t + res
    return y


if __name__ == "__main__":
    B, T, A = 2, 8, 4
    id_len, id_emb_dim = 10, 16
    hidden_dims, output_dims, depth = 32, 16, 2    # -> 3 ConvBlocks, dilations 1,2,4
    n_other_feats = 2                              # module uses others[...,0] and [...,1]

    key = jax.random.PRNGKey(0)
    k_par, k_oth, k_ids = jax.random.split(key, 3)

    params = init_params(k_par, input_dims=n_other_feats + 1,
                         output_dims=output_dims, id_len=id_len,
                         id_emb_dim=id_emb_dim, hidden_dims=hidden_dims,
                         depth=depth)

    others = jax.random.normal(k_oth, (B, T, A, n_other_feats), jnp.float32)
    others = others.at[0, 3, 1, 0].set(jnp.nan)    # exercise the NaN-row path
    alert_ids = jax.random.randint(k_ids, (B, T, A, 1), 0, id_len + 1).astype(jnp.float32)
    x = jnp.concatenate([others, alert_ids], axis=-1)   # (B, T, A, 3)

    fwd = jax.jit(ts_encoder_a_forward, static_argnames=("mask_mode",))
    out = fwd(params, x)
    jax.block_until_ready(out)

    ref = ts_encoder_a_reference(params, x)

    assert out.shape == (B, T, output_dims)
    assert bool(jnp.all(jnp.isfinite(out)))
    # bf16 matmuls with f32 accumulation -> loose tolerance vs. the f32 reference.
    assert bool(jnp.allclose(out, ref, atol=1e-1, rtol=1e-1)), \
        float(jnp.max(jnp.abs(out - ref)))
    print("KERNEL_OK")
</pallas_src>

<mosaic_0001>
module attributes {stable_mosaic.version = 11 : i64} {
  func.func @_frontend_kernel(%arg0: i32, %arg1: memref<16x4x16xf32, #tpu.memory_space<vmem>>, %arg2: memref<16x4x1xf32, #tpu.memory_space<vmem>>, %arg3: memref<16x1xf32, #tpu.memory_space<vmem>>, %arg4: memref<16x32xbf16, #tpu.memory_space<vmem>>, %arg5: memref<1x32xf32, #tpu.memory_space<vmem>>, %arg6: memref<16x32xf32, #tpu.memory_space<vmem>>) attributes {dimension_semantics = [#tpu.dimension_semantics<parallel>], iteration_bounds = array<i64: 1>, scalar_prefetch = 0 : i64, scratch_operands = 0 : i64, tpu.core_type = #tpu.core_type<tc>, window_params = [{transform_indices = @transform_0, window_bounds = array<i64: 16, 4, 16>}, {transform_indices = @transform_1, window_bounds = array<i64: 16, 4, 1>}, {transform_indices = @transform_2, window_bounds = array<i64: 16, 1>}, {pipeline_mode = #tpu.pipeline_mode<synchronous>, transform_indices = @transform_3, window_bounds = array<i64: 16, 32>}, {pipeline_mode = #tpu.pipeline_mode<synchronous>, transform_indices = @transform_4, window_bounds = array<i64: 1, 32>}, {transform_indices = @transform_5, window_bounds = array<i64: 16, 32>}]} {
    %c0 = arith.constant 0 : index
    %c0_0 = arith.constant 0 : index
    %c0_1 = arith.constant 0 : index
    %0 = vector.load %arg1[%c0, %c0_0, %c0_1] : memref<16x4x16xf32, #tpu.memory_space<vmem>>, vector<16x4x16xf32>
    %c0_2 = arith.constant 0 : index
    %c0_3 = arith.constant 0 : index
    %c0_4 = arith.constant 0 : index
    %1 = vector.load %arg2[%c0_2, %c0_3, %c0_4] : memref<16x4x1xf32, #tpu.memory_space<vmem>>, vector<16x4x1xf32>
    %2 = vector.broadcast %1 : vector<16x4x1xf32> to vector<16x4x16xf32>
    %3 = arith.mulf %0, %2 : vector<16x4x16xf32>
    %cst = arith.constant dense<0.000000e+00> : vector<16x16xf32>
    %4 = vector.multi_reduction <add>, %3, %cst [1] : vector<16x4x16xf32> to vector<16x16xf32>
    %5 = arith.cmpf one, %4, %4 : vector<16x16xf32>
    %cst_5 = arith.constant 0.000000e+00 : f32
    %6 = vector.broadcast %cst_5 : f32 to vector<16x16xf32>
    %7 = arith.select %5, %6, %4 : vector<16x16xi1>, vector<16x16xf32>
    %8 = arith.extui %5 : vector<16x16xi1> to vector<16x16xi32>
    %9 = arith.sitofp %8 : vector<16x16xi32> to vector<16x16xf32>
    %cst_6 = arith.constant dense<0xFF800000> : vector<16xf32>
    %10 = vector.multi_reduction <maximumf>, %9, %cst_6 [1] : vector<16x16xf32> to vector<16xf32>
    %11 = vector.shape_cast %10 : vector<16xf32> to vector<16x1xf32>
    %c0_7 = arith.constant 0 : index
    %c0_8 = arith.constant 0 : index
    %12 = vector.load %arg3[%c0_7, %c0_8] : memref<16x1xf32, #tpu.memory_space<vmem>>, vector<16x1xf32>
    %cst_9 = arith.constant 1.000000e+00 : f32
    %13 = vector.broadcast %cst_9 : f32 to vector<16x1xf32>
    %14 = arith.subf %13, %11 : vector<16x1xf32>
    %15 = arith.mulf %12, %14 : vector<16x1xf32>
    %16 = arith.truncf %7 : vector<16x16xf32> to vector<16x16xbf16>
    %c0_10 = arith.constant 0 : index
    %c0_11 = arith.constant 0 : index
    %17 = vector.load %arg4[%c0_10, %c0_11] : memref<16x32xbf16, #tpu.memory_space<vmem>>, vector<16x32xbf16>
    %cst_12 = arith.constant dense<0.000000e+00> : vector<16x32xf32>
    %18 = tpu.matmul %16, %17, %cst_12 {dimension_numbers = #tpu.dot_dimension_numbers<[1], [0], [0], [1], [0, 0, 1, 1], [], []>} : vector<16x16xbf16>, vector<16x32xbf16>, vector<16x32xf32> -> vector<16x32xf32>
    %c0_13 = arith.constant 0 : index
    %c0_14 = arith.constant 0 : index
    %19 = vector.load %arg5[%c0_13, %c0_14] : memref<1x32xf32, #tpu.memory_space<vmem>>, vector<1x32xf32>
    %20 = vector.broadcast %19 : vector<1x32xf32> to vector<16x32xf32>
    %21 = arith.addf %18, %20 : vector<16x32xf32>
    %22 = vector.broadcast %15 : vector<16x1xf32> to vector<16x32xf32>
    %23 = arith.mulf %21, %22 : vector<16x32xf32>
    %c0_15 = arith.constant 0 : index
    %c0_16 = arith.constant 0 : index
    %24 = vector.load %arg6[%c0_15, %c0_16] : memref<16x32xf32, #tpu.memory_space<vmem>>, vector<16x32xf32>
    tpu.vector_store %arg6[%c0_15, %c0_16], %23 {strides = array<i32>} : memref<16x32xf32, #tpu.memory_space<vmem>>, vector<16x32xf32>,
    return
  }
  func.func @transform_0(%arg0: i32) -> (i32, i32, i32) {
    %c0_i32 = arith.constant 0 : i32
    %c0_i32_0 = arith.constant 0 : i32
    %c0_i32_1 = arith.constant 0 : i32
    return %arg0, %c0_i32, %c0_i32_0 : i32, i32, i32
  }
  func.func @transform_1(%arg0: i32) -> (i32, i32, i32) {
    %c0_i32 = arith.constant 0 : i32
    %c0_i32_0 = arith.constant 0 : i32
    %c0_i32_1 = arith.constant 0 : i32
    return %arg0, %c0_i32, %c0_i32_0 : i32, i32, i32
  }
  func.func @transform_2(%arg0: i32) -> (i32, i32) {
    %c0_i32 = arith.constant 0 : i32
    %c0_i32_0 = arith.constant 0 : i32
    return %arg0, %c0_i32 : i32, i32
  }
  func.func @transform_3(%arg0: i32) -> (i32, i32) {
    %c0_i32 = arith.constant 0 : i32
    %c0_i32_0 = arith.constant 0 : i32
    %c0_i32_1 = arith.constant 0 : i32
    return %c0_i32, %c0_i32_0 : i32, i32
  }
  func.func @transform_4(%arg0: i32) -> (i32, i32) {
    %c0_i32 = arith.constant 0 : i32
    %c0_i32_0 = arith.constant 0 : i32
    %c0_i32_1 = arith.constant 0 : i32
    return %c0_i32, %c0_i32_0 : i32, i32
  }
  func.func @transform_5(%arg0: i32) -> (i32, i32) {
    %c0_i32 = arith.constant 0 : i32
    %c0_i32_0 = arith.constant 0 : i32
    return %arg0, %c0_i32 : i32, i32
  }
}

module attributes {stable_mosaic.version = 11 : i64} {
  func.func @kernel(%arg0: i32, %arg1: memref<2x8x32xf32, #tpu.memory_space<vmem>>, %arg2: memref<3x32x32xbf16, #tpu.memory_space<vmem>>, %arg3: memref<1x32xf32, #tpu.memory_space<vmem>>, %arg4: memref<3x32x32xbf16, #tpu.memory_space<vmem>>, %arg5: memref<1x32xf32, #tpu.memory_space<vmem>>, %arg6: memref<3x32x32xbf16, #tpu.memory_space<vmem>>, %arg7: memref<1x32xf32, #tpu.memory_space<vmem>>, %arg8: memref<3x32x32xbf16, #tpu.memory_space<vmem>>, %arg9: memref<1x32xf32, #tpu.memory_space<vmem>>, %arg10: memref<3x32x16xbf16, #tpu.memory_space<vmem>>, %arg11: memref<1x16xf32, #tpu.memory_space<vmem>>, %arg12: memref<3x16x16xbf16, #tpu.memory_space<vmem>>, %arg13: memref<1x16xf32, #tpu.memory_space<vmem>>, %arg14: memref<32x16xbf16, #tpu.memory_space<vmem>>, %arg15: memref<1x16xf32, #tpu.memory_space<vmem>>, %arg16: memref<2x8x16xf32, #tpu.memory_space<vmem>>, %arg17: memref<2x24x32xf32, #tpu.memory_space<vmem>>) attributes {dimension_semantics = [#tpu.dimension_semantics<parallel>], iteration_bounds = array<i64: 1>, scalar_prefetch = 0 : i64, scratch_operands = 1 : i64, tpu.core_type = #tpu.core_type<tc>, window_params = [{transform_indices = @transform_0, window_bounds = array<i64: 2, 8, 32>}, {pipeline_mode = #tpu.pipeline_mode<synchronous>, transform_indices = @transform_1, window_bounds = array<i64: 3, 32, 32>}, {pipeline_mode = #tpu.pipeline_mode<synchronous>, transform_indices = @transform_2, window_bounds = array<i64: 1, 32>}, {pipeline_mode = #tpu.pipeline_mode<synchronous>, transform_indices = @transform_3, window_bounds = array<i64: 3, 32, 32>}, {pipeline_mode = #tpu.pipeline_mode<synchronous>, transform_indices = @transform_4, window_bounds = array<i64: 1, 32>}, {pipeline_mode = #tpu.pipeline_mode<synchronous>, transform_indices = @transform_5, window_bounds = array<i64: 3, 32, 32>}, {pipeline_mode = #tpu.pipeline_mode<synchronous>, transform_indices = @transform_6, window_bounds = array<i64: 1, 32>}, {pipeline_mode = #tpu.pipeline_mode<synchronous>, transform_indices = @transform_7, window_bounds = array<i64: 3, 32, 32>}, {pipeline_mode = #tpu.pipeline_mode<synchronous>, transform_indices = @transform_8, window_bounds = array<i64: 1, 32>}, {pipeline_mode = #tpu.pipeline_mode<synchronous>, transform_indices = @transform_9, window_bounds = array<i64: 3, 32, 16>}, {pipeline_mode = #tpu.pipeline_mode<synchronous>, transform_indices = @transform_10, window_bounds = array<i64: 1, 16>}, {pipeline_mode = #tpu.pipeline_mode<synchronous>, transform_indices = @transform_11, window_bounds = array<i64: 3, 16, 16>}, {pipeline_mode = #tpu.pipeline_mode<synchronous>, transform_indices = @transform_12, window_bounds = array<i64: 1, 16>}, {pipeline_mode = #tpu.pipeline_mode<synchronous>, transform_indices = @transform_13, window_bounds = array<i64: 32, 16>}, {pipeline_mode = #tpu.pipeline_mode<synchronous>, transform_indices = @transform_14, window_bounds = array<i64: 1, 16>}, {transform_indices = @transform_15, window_bounds = array<i64: 2, 8, 16>}]} {
    %cst = arith.constant 0.000000e+00 : f32
    %0 = vector.broadcast %cst : f32 to vector<2x8x32xf32>
    %c0 = arith.constant 0 : index
    %c0_0 = arith.constant 0 : index
    %c0_1 = arith.constant 0 : index
    %1 = vector.load %arg17[%c0, %c0_0, %c0_1] : memref<2x24x32xf32, #tpu.memory_space<vmem>>, vector<2x8x32xf32>
    tpu.vector_store %arg17[%c0, %c0_0, %c0_1], %0 {strides = array<i32>} : memref<2x24x32xf32, #tpu.memory_space<vmem>>, vector<2x8x32xf32>,
    %cst_2 = arith.constant 0.000000e+00 : f32
    %2 = vector.broadcast %cst_2 : f32 to vector<2x8x32xf32>
    %c0_3 = arith.constant 0 : index
    %c16 = arith.constant 16 : index
    %c0_4 = arith.constant 0 : index
    %3 = vector.load %arg17[%c0_3, %c16, %c0_4] : memref<2x24x32xf32, #tpu.memory_space<vmem>>, vector<2x8x32xf32>
    tpu.vector_store %arg17[%c0_3, %c16, %c0_4], %2 {strides = array<i32>} : memref<2x24x32xf32, #tpu.memory_space<vmem>>, vector<2x8x32xf32>,
    %c0_5 = arith.constant 0 : index
    %c0_6 = arith.constant 0 : index
    %c0_7 = arith.constant 0 : index
    %4 = vector.load %arg1[%c0_5, %c0_6, %c0_7] : memref<2x8x32xf32, #tpu.memory_space<vmem>>, vector<2x8x32xf32>
    %5 = vector.shape_cast %4 : vector<2x8x32xf32> to vector<16x32xf32>
    %cst_8 = arith.constant 5.000000e-01 : f32
    %6 = vector.broadcast %cst_8 : f32 to vector<2x8x32xf32>
    %7 = arith.mulf %6, %4 : vector<2x8x32xf32>
    %cst_9 = arith.constant 0.707106769 : f32
    %8 = vector.broadcast %cst_9 : f32 to vector<2x8x32xf32>
    %9 = arith.mulf %4, %8 : vector<2x8x32xf32>
    %10 = math.absf %9 : vector<2x8x32xf32>
    %cst_10 = arith.constant 0.327591091 : f32
    %11 = vector.broadcast %cst_10 : f32 to vector<2x8x32xf32>
    %12 = arith.mulf %11, %10 : vector<2x8x32xf32>
    %cst_11 = arith.constant 1.000000e+00 : f32
    %13 = vector.broadcast %cst_11 : f32 to vector<2x8x32xf32>
    %14 = arith.addf %13, %12 : vector<2x8x32xf32>
    %cst_12 = arith.constant 1.000000e+00 : f32
    %15 = vector.broadcast %cst_12 : f32 to vector<2x8x32xf32>
    %16 = arith.divf %15, %14 : vector<2x8x32xf32>
    %cst_13 = arith.constant 1.06140542 : f32
    %17 = vector.broadcast %cst_13 : f32 to vector<2x8x32xf32>
    %18 = arith.mulf %17, %16 : vector<2x8x32xf32>
    %cst_14 = arith.constant -1.45315206 : f32
    %19 = vector.broadcast %cst_14 : f32 to vector<2x8x32xf32>
    %20 = arith.addf %18, %19 : vector<2x8x32xf32>
    %21 = arith.mulf %20, %16 : vector<2x8x32xf32>
    %cst_15 = arith.constant 1.42141378 : f32
    %22 = vector.broadcast %cst_15 : f32 to vector<2x8x32xf32>
    %23 = arith.addf %21, %22 : vector<2x8x32xf32>
    %24 = arith.mulf %23, %16 : vector<2x8x32xf32>
    %cst_16 = arith.constant -0.284496725 : f32
    %25 = vector.broadcast %cst_16 : f32 to vector<2x8x32xf32>
    %26 = arith.addf %24, %25 : vector<2x8x32xf32>
    %27 = arith.mulf %26, %16 : vector<2x8x32xf32>
    %cst_17 = arith.constant 0.254829586 : f32
    %28 = vector.broadcast %cst_17 : f32 to vector<2x8x32xf32>
    %29 = arith.addf %27, %28 : vector<2x8x32xf32>
    %30 = arith.mulf %29, %16 : vector<2x8x32xf32>
    %cst_18 = arith.constant 0.000000e+00 : f32
    %31 = vector.broadcast %cst_18 : f32 to vector<2x8x32xf32>
    %32 = arith.subf %31, %10 : vector<2x8x32xf32>
    %33 = arith.mulf %32, %10 : vector<2x8x32xf32>
    %34 = math.exp %33 : vector<2x8x32xf32>
    %35 = arith.mulf %30, %34 : vector<2x8x32xf32>
    %cst_19 = arith.constant 1.000000e+00 : f32
    %36 = vector.broadcast %cst_19 : f32 to vector<2x8x32xf32>
    %37 = arith.subf %36, %35 : vector<2x8x32xf32>
    %cst_20 = arith.constant 0.000000e+00 : f32
    %38 = vector.broadcast %cst_20 : f32 to vector<2x8x32xf32>
    %39 = arith.cmpf oge, %9, %38 : vector<2x8x32xf32>
    %cst_21 = arith.constant 0.000000e+00 : f32
    %40 = vector.broadcast %cst_21 : f32 to vector<2x8x32xf32>
    %41 = arith.subf %40, %37 : vector<2x8x32xf32>
    %42 = arith.select %39, %37, %41 : vector<2x8x32xi1>, vector<2x8x32xf32>
    %cst_22 = arith.constant 1.000000e+00 : f32
    %43 = vector.broadcast %cst_22 : f32 to vector<2x8x32xf32>
    %44 = arith.addf %43, %42 : vector<2x8x32xf32>
    %45 = arith.mulf %7, %44 : vector<2x8x32xf32>
    %c0_23 = arith.constant 0 : index
    %c8 = arith.constant 8 : index
    %c0_24 = arith.constant 0 : index
    %46 = vector.load %arg17[%c0_23, %c8, %c0_24] : memref<2x24x32xf32, #tpu.memory_space<vmem>>, vector<2x8x32xf32>
    tpu.vector_store %arg17[%c0_23, %c8, %c0_24], %45 {strides = array<i32>} : memref<2x24x32xf32, #tpu.memory_space<vmem>>, vector<2x8x32xf32>,
    %cst_25 = arith.constant 0.000000e+00 : f32
    %47 = vector.broadcast %cst_25 : f32 to vector<16x32xf32>
    %c0_26 = arith.constant 0 : index
    %c7 = arith.constant 7 : index
    %c0_27 = arith.constant 0 : index
    %48 = vector.load %arg17[%c0_26, %c7, %c0_27] : memref<2x24x32xf32, #tpu.memory_space<vmem>>, vector<2x8x32xf32>
    %49 = vector.shape_cast %48 : vector<2x8x32xf32> to vector<16x32xf32>
    %50 = arith.truncf %49 : vector<16x32xf32> to vector<16x32xbf16>
    %c0_28 = arith.constant 0 : index
    %c0_29 = arith.constant 0 : index
    %c0_30 = arith.constant 0 : index
    %51 = vector.load %arg2[%c0_28, %c0_29, %c0_30] : memref<3x32x32xbf16, #tpu.memory_space<vmem>>, vector<1x32x32xbf16>
    %52 = vector.shape_cast %51 : vector<1x32x32xbf16> to vector<32x32xbf16>
    %cst_31 = arith.constant dense<0.000000e+00> : vector<16x32xf32>
    %53 = tpu.matmul %50, %52, %cst_31 {dimension_numbers = #tpu.dot_dimension_numbers<[1], [0], [0], [1], [0, 0, 1, 1], [], []>} : vector<16x32xbf16>, vector<32x32xbf16>, vector<16x32xf32> -> vector<16x32xf32>
    %54 = arith.addf %47, %53 : vector<16x32xf32>
    %c0_32 = arith.constant 0 : index
    %c8_33 = arith.constant 8 : index
    %c0_34 = arith.constant 0 : index
    %55 = vector.load %arg17[%c0_32, %c8_33, %c0_34] : memref<2x24x32xf32, #tpu.memory_space<vmem>>, vector<2x8x32xf32>
    %56 = vector.shape_cast %55 : vector<2x8x32xf32> to vector<16x32xf32>
    %57 = arith.truncf %56 : vector<16x32xf32> to vector<16x32xbf16>
    %c1 = arith.constant 1 : index
    %c0_35 = arith.constant 0 : index
    %c0_36 = arith.constant 0 : index
    %58 = vector.load %arg2[%c1, %c0_35, %c0_36] : memref<3x32x32xbf16, #tpu.memory_space<vmem>>, vector<1x32x32xbf16>
    %59 = vector.shape_cast %58 : vector<1x32x32xbf16> to vector<32x32xbf16>
    %cst_37 = arith.constant dense<0.000000e+00> : vector<16x32xf32>
    %60 = tpu.matmul %57, %59, %cst_37 {dimension_numbers = #tpu.dot_dimension_numbers<[1], [0], [0], [1], [0, 0, 1, 1], [], []>} : vector<16x32xbf16>, vector<32x32xbf16>, vector<16x32xf32> -> vector<16x32xf32>
    %61 = arith.addf %54, %60 : vector<16x32xf32>
    %c0_38 = arith.constant 0 : index
    %c9 = arith.constant 9 : index
    %c0_39 = arith.constant 0 : index
    %62 = vector.load %arg17[%c0_38, %c9, %c0_39] : memref<2x24x32xf32, #tpu.memory_space<vmem>>, vector<2x8x32xf32>
    %63 = vector.shape_cast %62 : vector<2x8x32xf32> to vector<16x32xf32>
    %64 = arith.truncf %63 : vector<16x32xf32> to vector<16x32xbf16>
    %c2 = arith.constant 2 : index
    %c0_40 = arith.constant 0 : index
    %c0_41 = arith.constant 0 : index
    %65 = vector.load %arg2[%c2, %c0_40, %c0_41] : memref<3x32x32xbf16, #tpu.memory_space<vmem>>, vector<1x32x32xbf16>
    %66 = vector.shape_cast %65 : vector<1x32x32xbf16> to vector<32x32xbf16>
    %cst_42 = arith.constant dense<0.000000e+00> : vector<16x32xf32>
    %67 = tpu.matmul %64, %66, %cst_42 {dimension_numbers = #tpu.dot_dimension_numbers<[1], [0], [0], [1], [0, 0, 1, 1], [], []>} : vector<16x32xbf16>, vector<32x32xbf16>, vector<16x32xf32> -> vector<16x32xf32>
    %68 = arith.addf %61, %67 : vector<16x32xf32>
    %c0_43 = arith.constant 0 : index
    %c0_44 = arith.constant 0 : index
    %69 = vector.load %arg3[%c0_43, %c0_44] : memref<1x32xf32, #tpu.memory_space<vmem>>, vector<1x32xf32>
    %70 = vector.broadcast %69 : vector<1x32xf32> to vector<16x32xf32>
    %71 = arith.addf %68, %70 : vector<16x32xf32>
    %cst_45 = arith.constant 5.000000e-01 : f32
    %72 = vector.broadcast %cst_45 : f32 to vector<16x32xf32>
    %73 = arith.mulf %72, %71 : vector<16x32xf32>
    %cst_46 = arith.constant 0.707106769 : f32
    %74 = vector.broadcast %cst_46 : f32 to vector<16x32xf32>
    %75 = arith.mulf %71, %74 : vector<16x32xf32>
    %76 = math.absf %75 : vector<16x32xf32>
    %cst_47 = arith.constant 0.327591091 : f32
    %77 = vector.broadcast %cst_47 : f32 to vector<16x32xf32>
    %78 = arith.mulf %77, %76 : vector<16x32xf32>
    %cst_48 = arith.constant 1.000000e+00 : f32
    %79 = vector.broadcast %cst_48 : f32 to vector<16x32xf32>
    %80 = arith.addf %79, %78 : vector<16x32xf32>
    %cst_49 = arith.constant 1.000000e+00 : f32
    %81 = vector.broadcast %cst_49 : f32 to vector<16x32xf32>
    %82 = arith.divf %81, %80 : vector<16x32xf32>
    %cst_50 = arith.constant 1.06140542 : f32
    %83 = vector.broadcast %cst_50 : f32 to vector<16x32xf32>
    %84 = arith.mulf %83, %82 : vector<16x32xf32>
    %cst_51 = arith.constant -1.45315206 : f32
    %85 = vector.broadcast %cst_51 : f32 to vector<16x32xf32>
    %86 = arith.addf %84, %85 : vector<16x32xf32>
    %87 = arith.mulf %86, %82 : vector<16x32xf32>
    %cst_52 = arith.constant 1.42141378 : f32
    %88 = vector.broadcast %cst_52 : f32 to vector<16x32xf32>
    %89 = arith.addf %87, %88 : vector<16x32xf32>
    %90 = arith.mulf %89, %82 : vector<16x32xf32>
    %cst_53 = arith.constant -0.284496725 : f32
    %91 = vector.broadcast %cst_53 : f32 to vector<16x32xf32>
    %92 = arith.addf %90, %91 : vector<16x32xf32>
    %93 = arith.mulf %92, %82 : vector<16x32xf32>
    %cst_54 = arith.constant 0.254829586 : f32
    %94 = vector.broadcast %cst_54 : f32 to vector<16x32xf32>
    %95 = arith.addf %93, %94 : vector<16x32xf32>
    %96 = arith.mulf %95, %82 : vector<16x32xf32>
    %cst_55 = arith.constant 0.000000e+00 : f32
    %97 = vector.broadcast %cst_55 : f32 to vector<16x32xf32>
    %98 = arith.subf %97, %76 : vector<16x32xf32>
    %99 = arith.mulf %98, %76 : vector<16x32xf32>
    %100 = math.exp %99 : vector<16x32xf32>
    %101 = arith.mulf %96, %100 : vector<16x32xf32>
    %cst_56 = arith.constant 1.000000e+00 : f32
    %102 = vector.broadcast %cst_56 : f32 to vector<16x32xf32>
    %103 = arith.subf %102, %101 : vector<16x32xf32>
    %cst_57 = arith.constant 0.000000e+00 : f32
    %104 = vector.broadcast %cst_57 : f32 to vector<16x32xf32>
    %105 = arith.cmpf oge, %75, %104 : vector<16x32xf32>
    %cst_58 = arith.constant 0.000000e+00 : f32
    %106 = vector.broadcast %cst_58 : f32 to vector<16x32xf32>
    %107 = arith.subf %106, %103 : vector<16x32xf32>
    %108 = arith.select %105, %103, %107 : vector<16x32xi1>, vector<16x32xf32>
    %cst_59 = arith.constant 1.000000e+00 : f32
    %109 = vector.broadcast %cst_59 : f32 to vector<16x32xf32>
    %110 = arith.addf %109, %108 : vector<16x32xf32>
    %111 = arith.mulf %73, %110 : vector<16x32xf32>
    %112 = vector.shape_cast %111 : vector<16x32xf32> to vector<2x8x32xf32>
    %c0_60 = arith.constant 0 : index
    %c8_61 = arith.constant 8 : index
    %c0_62 = arith.constant 0 : index
    %113 = vector.load %arg17[%c0_60, %c8_61, %c0_62] : memref<2x24x32xf32, #tpu.memory_space<vmem>>, vector<2x8x32xf32>
    tpu.vector_store %arg17[%c0_60, %c8_61, %c0_62], %112 {strides = array<i32>} : memref<2x24x32xf32, #tpu.memory_space<vmem>>, vector<2x8x32xf32>,
    %cst_63 = arith.constant 0.000000e+00 : f32
    %114 = vector.broadcast %cst_63 : f32 to vector<16x32xf32>
    %c0_64 = arith.constant 0 : index
    %c7_65 = arith.constant 7 : index
    %c0_66 = arith.constant 0 : index
    %115 = vector.load %arg17[%c0_64, %c7_65, %c0_66] : memref<2x24x32xf32, #tpu.memory_space<vmem>>, vector<2x8x32xf32>
    %116 = vector.shape_cast %115 : vector<2x8x32xf32> to vector<16x32xf32>
    %117 = arith.truncf %116 : vector<16x32xf32> to vector<16x32xbf16>
    %c0_67 = arith.constant 0 : index
    %c0_68 = arith.constant 0 : index
    %c0_69 = arith.constant 0 : index
    %118 = vector.load %arg4[%c0_67, %c0_68, %c0_69] : memref<3x32x32xbf16, #tpu.memory_space<vmem>>, vector<1x32x32xbf16>
    %119 = vector.shape_cast %118 : vector<1x32x32xbf16> to vector<32x32xbf16>
    %cst_70 = arith.constant dense<0.000000e+00> : vector<16x32xf32>
    %120 = tpu.matmul %117, %119, %cst_70 {dimension_numbers = #tpu.dot_dimension_numbers<[1], [0], [0], [1], [0, 0, 1, 1], [], []>} : vector<16x32xbf16>, vector<32x32xbf16>, vector<16x32xf32> -> vector<16x32xf32>
    %121 = arith.addf %114, %120 : vector<16x32xf32>
    %c0_71 = arith.constant 0 : index
    %c8_72 = arith.constant 8 : index
    %c0_73 = arith.constant 0 : index
    %122 = vector.load %arg17[%c0_71, %c8_72, %c0_73] : memref<2x24x32xf32, #tpu.memory_space<vmem>>, vector<2x8x32xf32>
    %123 = vector.shape_cast %122 : vector<2x8x32xf32> to vector<16x32xf32>
    %124 = arith.truncf %123 : vector<16x32xf32> to vector<16x32xbf16>
    %c1_74 = arith.constant 1 : index
    %c0_75 = arith.constant 0 : index
    %c0_76 = arith.constant 0 : index
    %125 = vector.load %arg4[%c1_74, %c0_75, %c0_76] : memref<3x32x32xbf16, #tpu.memory_space<vmem>>, vector<1x32x32xbf16>
    %126 = vector.shape_cast %125 : vector<1x32x32xbf16> to vector<32x32xbf16>
    %cst_77 = arith.constant dense<0.000000e+00> : vector<16x32xf32>
    %127 = tpu.matmul %124, %126, %cst_77 {dimension_numbers = #tpu.dot_dimension_numbers<[1], [0], [0], [1], [0, 0, 1, 1], [], []>} : vector<16x32xbf16>, vector<32x32xbf16>, vector<16x32xf32> -> vector<16x32xf32>
    %128 = arith.addf %121, %127 : vector<16x32xf32>
    %c0_78 = arith.constant 0 : index
    %c9_79 = arith.constant 9 : index
    %c0_80 = arith.constant 0 : index
    %129 = vector.load %arg17[%c0_78, %c9_79, %c0_80] : memref<2x24x32xf32, #tpu.memory_space<vmem>>, vector<2x8x32xf32>
    %130 = vector.shape_cast %129 : vector<2x8x32xf32> to vector<16x32xf32>
    %131 = arith.truncf %130 : vector<16x32xf32> to vector<16x32xbf16>
    %c2_81 = arith.constant 2 : index
    %c0_82 = arith.constant 0 : index
    %c0_83 = arith.constant 0 : index
    %132 = vector.load %arg4[%c2_81, %c0_82, %c0_83] : memref<3x32x32xbf16, #tpu.memory_space<vmem>>, vector<1x32x32xbf16>
    %133 = vector.shape_cast %132 : vector<1x32x32xbf16> to vector<32x32xbf16>
    %cst_84 = arith.constant dense<0.000000e+00> : vector<16x32xf32>
    %134 = tpu.matmul %131, %133, %cst_84 {dimension_numbers = #tpu.dot_dimension_numbers<[1], [0], [0], [1], [0, 0, 1, 1], [], []>} : vector<16x32xbf16>, vector<32x32xbf16>, vector<16x32xf32> -> vector<16x32xf32>
    %135 = arith.addf %128, %134 : vector<16x32xf32>
    %c0_85 = arith.constant 0 : index
    %c0_86 = arith.constant 0 : index
    %136 = vector.load %arg5[%c0_85, %c0_86] : memref<1x32xf32, #tpu.memory_space<vmem>>, vector<1x32xf32>
    %137 = vector.broadcast %136 : vector<1x32xf32> to vector<16x32xf32>
    %138 = arith.addf %135, %137 : vector<16x32xf32>
    %139 = arith.addf %138, %5 : vector<16x32xf32>
    %140 = vector.shape_cast %139 : vector<16x32xf32> to vector<2x8x32xf32>
    %141 = vector.shape_cast %140 : vector<2x8x32xf32> to vector<16x32xf32>
    %cst_87 = arith.constant 5.000000e-01 : f32
    %142 = vector.broadcast %cst_87 : f32 to vector<2x8x32xf32>
    %143 = arith.mulf %142, %140 : vector<2x8x32xf32>
    %cst_88 = arith.constant 0.707106769 : f32
    %144 = vector.broadcast %cst_88 : f32 to vector<2x8x32xf32>
    %145 = arith.mulf %140, %144 : vector<2x8x32xf32>
    %146 = math.absf %145 : vector<2x8x32xf32>
    %cst_89 = arith.constant 0.327591091 : f32
    %147 = vector.broadcast %cst_89 : f32 to vector<2x8x32xf32>
    %148 = arith.mulf %147, %146 : vector<2x8x32xf32>
    %cst_90 = arith.constant 1.000000e+00 : f32
    %149 = vector.broadcast %cst_90 : f32 to vector<2x8x32xf32>
    %150 = arith.addf %149, %148 : vector<2x8x32xf32>
    %cst_91 = arith.constant 1.000000e+00 : f32
    %151 = vector.broadcast %cst_91 : f32 to vector<2x8x32xf32>
    %152 = arith.divf %151, %150 : vector<2x8x32xf32>
    %cst_92 = arith.constant 1.06140542 : f32
    %153 = vector.broadcast %cst_92 : f32 to vector<2x8x32xf32>
    %154 = arith.mulf %153, %152 : vector<2x8x32xf32>
    %cst_93 = arith.constant -1.45315206 : f32
    %155 = vector.broadcast %cst_93 : f32 to vector<2x8x32xf32>
    %156 = arith.addf %154, %155 : vector<2x8x32xf32>
    %157 = arith.mulf %156, %152 : vector<2x8x32xf32>
    %cst_94 = arith.constant 1.42141378 : f32
    %158 = vector.broadcast %cst_94 : f32 to vector<2x8x32xf32>
    %159 = arith.addf %157, %158 : vector<2x8x32xf32>
    %160 = arith.mulf %159, %152 : vector<2x8x32xf32>
    %cst_95 = arith.constant -0.284496725 : f32
    %161 = vector.broadcast %cst_95 : f32 to vector<2x8x32xf32>
    %162 = arith.addf %160, %161 : vector<2x8x32xf32>
    %163 = arith.mulf %162, %152 : vector<2x8x32xf32>
    %cst_96 = arith.constant 0.254829586 : f32
    %164 = vector.broadcast %cst_96 : f32 to vector<2x8x32xf32>
    %165 = arith.addf %163, %164 : vector<2x8x32xf32>
    %166 = arith.mulf %165, %152 : vector<2x8x32xf32>
    %cst_97 = arith.constant 0.000000e+00 : f32
    %167 = vector.broadcast %cst_97 : f32 to vector<2x8x32xf32>
    %168 = arith.subf %167, %146 : vector<2x8x32xf32>
    %169 = arith.mulf %168, %146 : vector<2x8x32xf32>
    %170 = math.exp %169 : vector<2x8x32xf32>
    %171 = arith.mulf %166, %170 : vector<2x8x32xf32>
    %cst_98 = arith.constant 1.000000e+00 : f32
    %172 = vector.broadcast %cst_98 : f32 to vector<2x8x32xf32>
    %173 = arith.subf %172, %171 : vector<2x8x32xf32>
    %cst_99 = arith.constant 0.000000e+00 : f32
    %174 = vector.broadcast %cst_99 : f32 to vector<2x8x32xf32>
    %175 = arith.cmpf oge, %145, %174 : vector<2x8x32xf32>
    %cst_100 = arith.constant 0.000000e+00 : f32
    %176 = vector.broadcast %cst_100 : f32 to vector<2x8x32xf32>
    %177 = arith.subf %176, %173 : vector<2x8x32xf32>
    %178 = arith.select %175, %173, %177 : vector<2x8x32xi1>, vector<2x8x32xf32>
    %cst_101 = arith.constant 1.000000e+00 : f32
    %179 = vector.broadcast %cst_101 : f32 to vector<2x8x32xf32>
    %180 = arith.addf %179, %178 : vector<2x8x32xf32>
    %181 = arith.mulf %143, %180 : vector<2x8x32xf32>
    %c0_102 = arith.constant 0 : index
    %c8_103 = arith.constant 8 : index
    %c0_104 = arith.constant 0 : index
    %182 = vector.load %arg17[%c0_102, %c8_103, %c0_104] : memref<2x24x32xf32, #tpu.memory_space<vmem>>, vector<2x8x32xf32>
    tpu.vector_store %arg17[%c0_102, %c8_103, %c0_104], %181 {strides = array<i32>} : memref<2x24x32xf32, #tpu.memory_space<vmem>>, vector<2x8x32xf32>,
    %cst_105 = arith.constant 0.000000e+00 : f32
    %183 = vector.broadcast %cst_105 : f32 to vector<16x32xf32>
    %c0_106 = arith.constant 0 : index
    %c6 = arith.constant 6 : index
    %c0_107 = arith.constant 0 : index
    %184 = vector.load %arg17[%c0_106, %c6, %c0_107] : memref<2x24x32xf32, #tpu.memory_space<vmem>>, vector<2x8x32xf32>
    %185 = vector.shape_cast %184 : vector<2x8x32xf32> to vector<16x32xf32>
    %186 = arith.truncf %185 : vector<16x32xf32> to vector<16x32xbf16>
    %c0_108 = arith.constant 0 : index
    %c0_109 = arith.constant 0 : index
    %c0_110 = arith.constant 0 : index
    %187 = vector.load %arg6[%c0_108, %c0_109, %c0_110] : memref<3x32x32xbf16, #tpu.memory_space<vmem>>, vector<1x32x32xbf16>
    %188 = vector.shape_cast %187 : vector<1x32x32xbf16> to vector<32x32xbf16>
    %cst_111 = arith.constant dense<0.000000e+00> : vector<16x32xf32>
    %189 = tpu.matmul %186, %188, %cst_111 {dimension_numbers = #tpu.dot_dimension_numbers<[1], [0], [0], [1], [0, 0, 1, 1], [], []>} : vector<16x32xbf16>, vector<32x32xbf16>, vector<16x32xf32> -> vector<16x32xf32>
    %190 = arith.addf %183, %189 : vector<16x32xf32>
    %c0_112 = arith.constant 0 : index
    %c8_113 = arith.constant 8 : index
    %c0_114 = arith.constant 0 : index
    %191 = vector.load %arg17[%c0_112, %c8_113, %c0_114] : memref<2x24x32xf32, #tpu.memory_space<vmem>>, vector<2x8x32xf32>
    %192 = vector.shape_cast %191 : vector<2x8x32xf32> to vector<16x32xf32>
    %193 = arith.truncf %192 : vector<16x32xf32> to vector<16x32xbf16>
    %c1_115 = arith.constant 1 : index
    %c0_116 = arith.constant 0 : index
    %c0_117 = arith.constant 0 : index
    %194 = vector.load %arg6[%c1_115, %c0_116, %c0_117] : memref<3x32x32xbf16, #tpu.memory_space<vmem>>, vector<1x32x32xbf16>
    %195 = vector.shape_cast %194 : vector<1x32x32xbf16> to vector<32x32xbf16>
    %cst_118 = arith.constant dense<0.000000e+00> : vector<16x32xf32>
    %196 = tpu.matmul %193, %195, %cst_118 {dimension_numbers = #tpu.dot_dimension_numbers<[1], [0], [0], [1], [0, 0, 1, 1], [], []>} : vector<16x32xbf16>, vector<32x32xbf16>, vector<16x32xf32> -> vector<16x32xf32>
    %197 = arith.addf %190, %196 : vector<16x32xf32>
    %c0_119 = arith.constant 0 : index
    %c10 = arith.constant 10 : index
    %c0_120 = arith.constant 0 : index
    %198 = vector.load %arg17[%c0_119, %c10, %c0_120] : memref<2x24x32xf32, #tpu.memory_space<vmem>>, vector<2x8x32xf32>
    %199 = vector.shape_cast %198 : vector<2x8x32xf32> to vector<16x32xf32>
    %200 = arith.truncf %199 : vector<16x32xf32> to vector<16x32xbf16>
    %c2_121 = arith.constant 2 : index
    %c0_122 = arith.constant 0 : index
    %c0_123 = arith.constant 0 : index
    %201 = vector.load %arg6[%c2_121, %c0_122, %c0_123] : memref<3x32x32xbf16, #tpu.memory_space<vmem>>, vector<1x32x32xbf16>
    %202 = vector.shape_cast %201 : vector<1x32x32xbf16> to vector<32x32xbf16>
    %cst_124 = arith.constant dense<0.000000e+00> : vector<16x32xf32>
    %203 = tpu.matmul %200, %202, %cst_124 {dimension_numbers = #tpu.dot_dimension_numbers<[1], [0], [0], [1], [0, 0, 1, 1], [], []>} : vector<16x32xbf16>, vector<32x32xbf16>, vector<16x32xf32> -> vector<16x32xf32>
    %204 = arith.addf %197, %203 : vector<16x32xf32>
    %c0_125 = arith.constant 0 : index
    %c0_126 = arith.constant 0 : index
    %205 = vector.load %arg7[%c0_125, %c0_126] : memref<1x32xf32, #tpu.memory_space<vmem>>, vector<1x32xf32>
    %206 = vector.broadcast %205 : vector<1x32xf32> to vector<16x32xf32>
    %207 = arith.addf %204, %206 : vector<16x32xf32>
    %cst_127 = arith.constant 5.000000e-01 : f32
    %208 = vector.broadcast %cst_127 : f32 to vector<16x32xf32>
    %209 = arith.mulf %208, %207 : vector<16x32xf32>
    %cst_128 = arith.constant 0.707106769 : f32
    %210 = vector.broadcast %cst_128 : f32 to vector<16x32xf32>
    %211 = arith.mulf %207, %210 : vector<16x32xf32>
    %212 = math.absf %211 : vector<16x32xf32>
    %cst_129 = arith.constant 0.327591091 : f32
    %213 = vector.broadcast %cst_129 : f32 to vector<16x32xf32>
    %214 = arith.mulf %213, %212 : vector<16x32xf32>
    %cst_130 = arith.constant 1.000000e+00 : f32
    %215 = vector.broadcast %cst_130 : f32 to vector<16x32xf32>
    %216 = arith.addf %215, %214 : vector<16x32xf32>
    %cst_131 = arith.constant 1.000000e+00 : f32
    %217 = vector.broadcast %cst_131 : f32 to vector<16x32xf32>
    %218 = arith.divf %217, %216 : vector<16x32xf32>
    %cst_132 = arith.constant 1.06140542 : f32
    %219 = vector.broadcast %cst_132 : f32 to vector<16x32xf32>
    %220 = arith.mulf %219, %218 : vector<16x32xf32>
    %cst_133 = arith.constant -1.45315206 : f32
    %221 = vector.broadcast %cst_133 : f32 to vector<16x32xf32>
    %222 = arith.addf %220, %221 : vector<16x32xf32>
    %223 = arith.mulf %222, %218 : vector<16x32xf32>
    %cst_134 = arith.constant 1.42141378 : f32
    %224 = vector.broadcast %cst_134 : f32 to vector<16x32xf32>
    %225 = arith.addf %223, %224 : vector<16x32xf32>
    %226 = arith.mulf %225, %218 : vector<16x32xf32>
    %cst_135 = arith.constant -0.284496725 : f32
    %227 = vector.broadcast %cst_135 : f32 to vector<16x32xf32>
    %228 = arith.addf %226, %227 : vector<16x32xf32>
    %229 = arith.mulf %228, %218 : vector<16x32xf32>
    %cst_136 = arith.constant 0.254829586 : f32
    %230 = vector.broadcast %cst_136 : f32 to vector<16x32xf32>
    %231 = arith.addf %229, %230 : vector<16x32xf32>
    %232 = arith.mulf %231, %218 : vector<16x32xf32>
    %cst_137 = arith.constant 0.000000e+00 : f32
    %233 = vector.broadcast %cst_137 : f32 to vector<16x32xf32>
    %234 = arith.subf %233, %212 : vector<16x32xf32>
    %235 = arith.mulf %234, %212 : vector<16x32xf32>
    %236 = math.exp %235 : vector<16x32xf32>
    %237 = arith.mulf %232, %236 : vector<16x32xf32>
    %cst_138 = arith.constant 1.000000e+00 : f32
    %238 = vector.broadcast %cst_138 : f32 to vector<16x32xf32>
    %239 = arith.subf %238, %237 : vector<16x32xf32>
    %cst_139 = arith.constant 0.000000e+00 : f32
    %240 = vector.broadcast %cst_139 : f32 to vector<16x32xf32>
    %241 = arith.cmpf oge, %211, %240 : vector<16x32xf32>
    %cst_140 = arith.constant 0.000000e+00 : f32
    %242 = vector.broadcast %cst_140 : f32 to vector<16x32xf32>
    %243 = arith.subf %242, %239 : vector<16x32xf32>
    %244 = arith.select %241, %239, %243 : vector<16x32xi1>, vector<16x32xf32>
    %cst_141 = arith.constant 1.000000e+00 : f32
    %245 = vector.broadcast %cst_141 : f32 to vector<16x32xf32>
    %246 = arith.addf %245, %244 : vector<16x32xf32>
    %247 = arith.mulf %209, %246 : vector<16x32xf32>
    %248 = vector.shape_cast %247 : vector<16x32xf32> to vector<2x8x32xf32>
    %c0_142 = arith.constant 0 : index
    %c8_143 = arith.constant 8 : index
    %c0_144 = arith.constant 0 : index
    %249 = vector.load %arg17[%c0_142, %c8_143, %c0_144] : memref<2x24x32xf32, #tpu.memory_space<vmem>>, vector<2x8x32xf32>
    tpu.vector_store %arg17[%c0_142, %c8_143, %c0_144], %248 {strides = array<i32>} : memref<2x24x32xf32, #tpu.memory_space<vmem>>, vector<2x8x32xf32>,
    %cst_145 = arith.constant 0.000000e+00 : f32
    %250 = vector.broadcast %cst_145 : f32 to vector<16x32xf32>
    %c0_146 = arith.constant 0 : index
    %c6_147 = arith.constant 6 : index
    %c0_148 = arith.constant 0 : index
    %251 = vector.load %arg17[%c0_146, %c6_147, %c0_148] : memref<2x24x32xf32, #tpu.memory_space<vmem>>, vector<2x8x32xf32>
    %252 = vector.shape_cast %251 : vector<2x8x32xf32> to vector<16x32xf32>
    %253 = arith.truncf %252 : vector<16x32xf32> to vector<16x32xbf16>
    %c0_149 = arith.constant 0 : index
    %c0_150 = arith.constant 0 : index
    %c0_151 = arith.constant 0 : index
    %254 = vector.load %arg8[%c0_149, %c0_150, %c0_151] : memref<3x32x32xbf16, #tpu.memory_space<vmem>>, vector<1x32x32xbf16>
    %255 = vector.shape_cast %254 : vector<1x32x32xbf16> to vector<32x32xbf16>
    %cst_152 = arith.constant dense<0.000000e+00> : vector<16x32xf32>
    %256 = tpu.matmul %253, %255, %cst_152 {dimension_numbers = #tpu.dot_dimension_numbers<[1], [0], [0], [1], [0, 0, 1, 1], [], []>} : vector<16x32xbf16>, vector<32x32xbf16>, vector<16x32xf32> -> vector<16x32xf32>
    %257 = arith.addf %250, %256 : vector<16x32xf32>
    %c0_153 = arith.constant 0 : index
    %c8_154 = arith.constant 8 : index
    %c0_155 = arith.constant 0 : index
    %258 = vector.load %arg17[%c0_153, %c8_154, %c0_155] : memref<2x24x32xf32, #tpu.memory_space<vmem>>, vector<2x8x32xf32>
    %259 = vector.shape_cast %258 : vector<2x8x32xf32> to vector<16x32xf32>
    %260 = arith.truncf %259 : vector<16x32xf32> to vector<16x32xbf16>
    %c1_156 = arith.constant 1 : index
    %c0_157 = arith.constant 0 : index
    %c0_158 = arith.constant 0 : index
    %261 = vector.load %arg8[%c1_156, %c0_157, %c0_158] : memref<3x32x32xbf16, #tpu.memory_space<vmem>>, vector<1x32x32xbf16>
    %262 = vector.shape_cast %261 : vector<1x32x32xbf16> to vector<32x32xbf16>
    %cst_159 = arith.constant dense<0.000000e+00> : vector<16x32xf32>
    %263 = tpu.matmul %260, %262, %cst_159 {dimension_numbers = #tpu.dot_dimension_numbers<[1], [0], [0], [1], [0, 0, 1, 1], [], []>} : vector<16x32xbf16>, vector<32x32xbf16>, vector<16x32xf32> -> vector<16x32xf32>
    %264 = arith.addf %257, %263 : vector<16x32xf32>
    %c0_160 = arith.constant 0 : index
    %c10_161 = arith.constant 10 : index
    %c0_162 = arith.constant 0 : index
    %265 = vector.load %arg17[%c0_160, %c10_161, %c0_162] : memref<2x24x32xf32, #tpu.memory_space<vmem>>, vector<2x8x32xf32>
    %266 = vector.shape_cast %265 : vector<2x8x32xf32> to vector<16x32xf32>
    %267 = arith.truncf %266 : vector<16x32xf32> to vector<16x32xbf16>
    %c2_163 = arith.constant 2 : index
    %c0_164 = arith.constant 0 : index
    %c0_165 = arith.constant 0 : index
    %268 = vector.load %arg8[%c2_163, %c0_164, %c0_165] : memref<3x32x32xbf16, #tpu.memory_space<vmem>>, vector<1x32x32xbf16>
    %269 = vector.shape_cast %268 : vector<1x32x32xbf16> to vector<32x32xbf16>
    %cst_166 = arith.constant dense<0.000000e+00> : vector<16x32xf32>
    %270 = tpu.matmul %267, %269, %cst_166 {dimension_numbers = #tpu.dot_dimension_numbers<[1], [0], [0], [1], [0, 0, 1, 1], [], []>} : vector<16x32xbf16>, vector<32x32xbf16>, vector<16x32xf32> -> vector<16x32xf32>
    %271 = arith.addf %264, %270 : vector<16x32xf32>
    %c0_167 = arith.constant 0 : index
    %c0_168 = arith.constant 0 : index
    %272 = vector.load %arg9[%c0_167, %c0_168] : memref<1x32xf32, #tpu.memory_space<vmem>>, vector<1x32xf32>
    %273 = vector.broadcast %272 : vector<1x32xf32> to vector<16x32xf32>
    %274 = arith.addf %271, %273 : vector<16x32xf32>
    %275 = arith.addf %274, %141 : vector<16x32xf32>
    %276 = vector.shape_cast %275 : vector<16x32xf32> to vector<2x8x32xf32>
    %277 = vector.shape_cast %276 : vector<2x8x32xf32> to vector<16x32xf32>
    %278 = arith.truncf %277 : vector<16x32xf32> to vector<16x32xbf16>
    %c0_169 = arith.constant 0 : index
    %c0_170 = arith.constant 0 : index
    %279 = vector.load %arg14[%c0_169, %c0_170] : memref<32x16xbf16, #tpu.memory_space<vmem>>, vector<32x16xbf16>
    %cst_171 = arith.constant dense<0.000000e+00> : vector<16x16xf32>
    %280 = tpu.matmul %278, %279, %cst_171 {dimension_numbers = #tpu.dot_dimension_numbers<[1], [0], [0], [1], [0, 0, 1, 1], [], []>} : vector<16x32xbf16>, vector<32x16xbf16>, vector<16x16xf32> -> vector<16x16xf32>
    %c0_172 = arith.constant 0 : index
    %c0_173 = arith.constant 0 : index
    %281 = vector.load %arg15[%c0_172, %c0_173] : memref<1x16xf32, #tpu.memory_space<vmem>>, vector<1x16xf32>
    %282 = vector.broadcast %281 : vector<1x16xf32> to vector<16x16xf32>
    %283 = arith.addf %280, %282 : vector<16x16xf32>
    %cst_174 = arith.constant 5.000000e-01 : f32
    %284 = vector.broadcast %cst_174 : f32 to vector<2x8x32xf32>
    %285 = arith.mulf %284, %276 : vector<2x8x32xf32>
    %cst_175 = arith.constant 0.707106769 : f32
    %286 = vector.broadcast %cst_175 : f32 to vector<2x8x32xf32>
    %287 = arith.mulf %276, %286 : vector<2x8x32xf32>
    %288 = math.absf %287 : vector<2x8x32xf32>
    %cst_176 = arith.constant 0.327591091 : f32
    %289 = vector.broadcast %cst_176 : f32 to vector<2x8x32xf32>
    %290 = arith.mulf %289, %288 : vector<2x8x32xf32>
    %cst_177 = arith.constant 1.000000e+00 : f32
    %291 = vector.broadcast %cst_177 : f32 to vector<2x8x32xf32>
    %292 = arith.addf %291, %290 : vector<2x8x32xf32>
    %cst_178 = arith.constant 1.000000e+00 : f32
    %293 = vector.broadcast %cst_178 : f32 to vector<2x8x32xf32>
    %294 = arith.divf %293, %292 : vector<2x8x32xf32>
    %cst_179 = arith.constant 1.06140542 : f32
    %295 = vector.broadcast %cst_179 : f32 to vector<2x8x32xf32>
    %296 = arith.mulf %295, %294 : vector<2x8x32xf32>
    %cst_180 = arith.constant -1.45315206 : f32
    %297 = vector.broadcast %cst_180 : f32 to vector<2x8x32xf32>
    %298 = arith.addf %296, %297 : vector<2x8x32xf32>
    %299 = arith.mulf %298, %294 : vector<2x8x32xf32>
    %cst_181 = arith.constant 1.42141378 : f32
    %300 = vector.broadcast %cst_181 : f32 to vector<2x8x32xf32>
    %301 = arith.addf %299, %300 : vector<2x8x32xf32>
    %302 = arith.mulf %301, %294 : vector<2x8x32xf32>
    %cst_182 = arith.constant -0.284496725 : f32
    %303 = vector.broadcast %cst_182 : f32 to vector<2x8x32xf32>
    %304 = arith.addf %302, %303 : vector<2x8x32xf32>
    %305 = arith.mulf %304, %294 : vector<2x8x32xf32>
    %cst_183 = arith.constant 0.254829586 : f32
    %306 = vector.broadcast %cst_183 : f32 to vector<2x8x32xf32>
    %307 = arith.addf %305, %306 : vector<2x8x32xf32>
    %308 = arith.mulf %307, %294 : vector<2x8x32xf32>
    %cst_184 = arith.constant 0.000000e+00 : f32
    %309 = vector.broadcast %cst_184 : f32 to vector<2x8x32xf32>
    %310 = arith.subf %309, %288 : vector<2x8x32xf32>
    %311 = arith.mulf %310, %288 : vector<2x8x32xf32>
    %312 = math.exp %311 : vector<2x8x32xf32>
    %313 = arith.mulf %308, %312 : vector<2x8x32xf32>
    %cst_185 = arith.constant 1.000000e+00 : f32
    %314 = vector.broadcast %cst_185 : f32 to vector<2x8x32xf32>
    %315 = arith.subf %314, %313 : vector<2x8x32xf32>
    %cst_186 = arith.constant 0.000000e+00 : f32
    %316 = vector.broadcast %cst_186 : f32 to vector<2x8x32xf32>
    %317 = arith.cmpf oge, %287, %316 : vector<2x8x32xf32>
    %cst_187 = arith.constant 0.000000e+00 : f32
    %318 = vector.broadcast %cst_187 : f32 to vector<2x8x32xf32>
    %319 = arith.subf %318, %315 : vector<2x8x32xf32>
    %320 = arith.select %317, %315, %319 : vector<2x8x32xi1>, vector<2x8x32xf32>
    %cst_188 = arith.constant 1.000000e+00 : f32
    %321 = vector.broadcast %cst_188 : f32 to vector<2x8x32xf32>
    %322 = arith.addf %321, %320 : vector<2x8x32xf32>
    %323 = arith.mulf %285, %322 : vector<2x8x32xf32>
    %c0_189 = arith.constant 0 : index
    %c8_190 = arith.constant 8 : index
    %c0_191 = arith.constant 0 : index
    %324 = vector.load %arg17[%c0_189, %c8_190, %c0_191] : memref<2x24x32xf32, #tpu.memory_space<vmem>>, vector<2x8x32xf32>
    tpu.vector_store %arg17[%c0_189, %c8_190, %c0_191], %323 {strides = array<i32>} : memref<2x24x32xf32, #tpu.memory_space<vmem>>, vector<2x8x32xf32>,
    %cst_192 = arith.constant 0.000000e+00 : f32
    %325 = vector.broadcast %cst_192 : f32 to vector<16x16xf32>
    %c0_193 = arith.constant 0 : index
    %c4 = arith.constant 4 : index
    %c0_194 = arith.constant 0 : index
    %326 = vector.load %arg17[%c0_193, %c4, %c0_194] : memref<2x24x32xf32, #tpu.memory_space<vmem>>, vector<2x8x32xf32>
    %327 = vector.shape_cast %326 : vector<2x8x32xf32> to vector<16x32xf32>
    %328 = arith.truncf %327 : vector<16x32xf32> to vector<16x32xbf16>
    %c0_195 = arith.constant 0 : index
    %c0_196 = arith.constant 0 : index
    %c0_197 = arith.constant 0 : index
    %329 = vector.load %arg10[%c0_195, %c0_196, %c0_197] : memref<3x32x16xbf16, #tpu.memory_space<vmem>>, vector<1x32x16xbf16>
    %330 = vector.shape_cast %329 : vector<1x32x16xbf16> to vector<32x16xbf16>
    %cst_198 = arith.constant dense<0.000000e+00> : vector<16x16xf32>
    %331 = tpu.matmul %328, %330, %cst_198 {dimension_numbers = #tpu.dot_dimension_numbers<[1], [0], [0], [1], [0, 0, 1, 1], [], []>} : vector<16x32xbf16>, vector<32x16xbf16>, vector<16x16xf32> -> vector<16x16xf32>
    %332 = arith.addf %325, %331 : vector<16x16xf32>
    %c0_199 = arith.constant 0 : index
    %c8_200 = arith.constant 8 : index
    %c0_201 = arith.constant 0 : index
    %333 = vector.load %arg17[%c0_199, %c8_200, %c0_201] : memref<2x24x32xf32, #tpu.memory_space<vmem>>, vector<2x8x32xf32>
    %334 = vector.shape_cast %333 : vector<2x8x32xf32> to vector<16x32xf32>
    %335 = arith.truncf %334 : vector<16x32xf32> to vector<16x32xbf16>
    %c1_202 = arith.constant 1 : index
    %c0_203 = arith.constant 0 : index
    %c0_204 = arith.constant 0 : index
    %336 = vector.load %arg10[%c1_202, %c0_203, %c0_204] : memref<3x32x16xbf16, #tpu.memory_space<vmem>>, vector<1x32x16xbf16>
    %337 = vector.shape_cast %336 : vector<1x32x16xbf16> to vector<32x16xbf16>
    %cst_205 = arith.constant dense<0.000000e+00> : vector<16x16xf32>
    %338 = tpu.matmul %335, %337, %cst_205 {dimension_numbers = #tpu.dot_dimension_numbers<[1], [0], [0], [1], [0, 0, 1, 1], [], []>} : vector<16x32xbf16>, vector<32x16xbf16>, vector<16x16xf32> -> vector<16x16xf32>
    %339 = arith.addf %332, %338 : vector<16x16xf32>
    %c0_206 = arith.constant 0 : index
    %c12 = arith.constant 12 : index
    %c0_207 = arith.constant 0 : index
    %340 = vector.load %arg17[%c0_206, %c12, %c0_207] : memref<2x24x32xf32, #tpu.memory_space<vmem>>, vector<2x8x32xf32>
    %341 = vector.shape_cast %340 : vector<2x8x32xf32> to vector<16x32xf32>
    %342 = arith.truncf %341 : vector<16x32xf32> to vector<16x32xbf16>
    %c2_208 = arith.constant 2 : index
    %c0_209 = arith.constant 0 : index
    %c0_210 = arith.constant 0 : index
    %343 = vector.load %arg10[%c2_208, %c0_209, %c0_210] : memref<3x32x16xbf16, #tpu.memory_space<vmem>>, vector<1x32x16xbf16>
    %344 = vector.shape_cast %343 : vector<1x32x16xbf16> to vector<32x16xbf16>
    %cst_211 = arith.constant dense<0.000000e+00> : vector<16x16xf32>
    %345 = tpu.matmul %342, %344, %cst_211 {dimension_numbers = #tpu.dot_dimension_numbers<[1], [0], [0], [1], [0, 0, 1, 1], [], []>} : vector<16x32xbf16>, vector<32x16xbf16>, vector<16x16xf32> -> vector<16x16xf32>
    %346 = arith.addf %339, %345 : vector<16x16xf32>
    %c0_212 = arith.constant 0 : index
    %c0_213 = arith.constant 0 : index
    %347 = vector.load %arg11[%c0_212, %c0_213] : memref<1x16xf32, #tpu.memory_space<vmem>>, vector<1x16xf32>
    %348 = vector.broadcast %347 : vector<1x16xf32> to vector<16x16xf32>
    %349 = arith.addf %346, %348 : vector<16x16xf32>
    %cst_214 = arith.constant 5.000000e-01 : f32
    %350 = vector.broadcast %cst_214 : f32 to vector<16x16xf32>
    %351 = arith.mulf %350, %349 : vector<16x16xf32>
    %cst_215 = arith.constant 0.707106769 : f32
    %352 = vector.broadcast %cst_215 : f32 to vector<16x16xf32>
    %353 = arith.mulf %349, %352 : vector<16x16xf32>
    %354 = math.absf %353 : vector<16x16xf32>
    %cst_216 = arith.constant 0.327591091 : f32
    %355 = vector.broadcast %cst_216 : f32 to vector<16x16xf32>
    %356 = arith.mulf %355, %354 : vector<16x16xf32>
    %cst_217 = arith.constant 1.000000e+00 : f32
    %357 = vector.broadcast %cst_217 : f32 to vector<16x16xf32>
    %358 = arith.addf %357, %356 : vector<16x16xf32>
    %cst_218 = arith.constant 1.000000e+00 : f32
    %359 = vector.broadcast %cst_218 : f32 to vector<16x16xf32>
    %360 = arith.divf %359, %358 : vector<16x16xf32>
    %cst_219 = arith.constant 1.06140542 : f32
    %361 = vector.broadcast %cst_219 : f32 to vector<16x16xf32>
    %362 = arith.mulf %361, %360 : vector<16x16xf32>
    %cst_220 = arith.constant -1.45315206 : f32
    %363 = vector.broadcast %cst_220 : f32 to vector<16x16xf32>
    %364 = arith.addf %362, %363 : vector<16x16xf32>
    %365 = arith.mulf %364, %360 : vector<16x16xf32>
    %cst_221 = arith.constant 1.42141378 : f32
    %366 = vector.broadcast %cst_221 : f32 to vector<16x16xf32>
    %367 = arith.addf %365, %366 : vector<16x16xf32>
    %368 = arith.mulf %367, %360 : vector<16x16xf32>
    %cst_222 = arith.constant -0.284496725 : f32
    %369 = vector.broadcast %cst_222 : f32 to vector<16x16xf32>
    %370 = arith.addf %368, %369 : vector<16x16xf32>
    %371 = arith.mulf %370, %360 : vector<16x16xf32>
    %cst_223 = arith.constant 0.254829586 : f32
    %372 = vector.broadcast %cst_223 : f32 to vector<16x16xf32>
    %373 = arith.addf %371, %372 : vector<16x16xf32>
    %374 = arith.mulf %373, %360 : vector<16x16xf32>
    %cst_224 = arith.constant 0.000000e+00 : f32
    %375 = vector.broadcast %cst_224 : f32 to vector<16x16xf32>
    %376 = arith.subf %375, %354 : vector<16x16xf32>
    %377 = arith.mulf %376, %354 : vector<16x16xf32>
    %378 = math.exp %377 : vector<16x16xf32>
    %379 = arith.mulf %374, %378 : vector<16x16xf32>
    %cst_225 = arith.constant 1.000000e+00 : f32
    %380 = vector.broadcast %cst_225 : f32 to vector<16x16xf32>
    %381 = arith.subf %380, %379 : vector<16x16xf32>
    %cst_226 = arith.constant 0.000000e+00 : f32
    %382 = vector.broadcast %cst_226 : f32 to vector<16x16xf32>
    %383 = arith.cmpf oge, %353, %382 : vector<16x16xf32>
    %cst_227 = arith.constant 0.000000e+00 : f32
    %384 = vector.broadcast %cst_227 : f32 to vector<16x16xf32>
    %385 = arith.subf %384, %381 : vector<16x16xf32>
    %386 = arith.select %383, %381, %385 : vector<16x16xi1>, vector<16x16xf32>
    %cst_228 = arith.constant 1.000000e+00 : f32
    %387 = vector.broadcast %cst_228 : f32 to vector<16x16xf32>
    %388 = arith.addf %387, %386 : vector<16x16xf32>
    %389 = arith.mulf %351, %388 : vector<16x16xf32>
    %390 = vector.shape_cast %389 : vector<16x16xf32> to vector<2x8x16xf32>
    %c0_229 = arith.constant 0 : index
    %c8_230 = arith.constant 8 : index
    %c0_231 = arith.constant 0 : index
    %391 = vector.load %arg17[%c0_229, %c8_230, %c0_231] : memref<2x24x32xf32, #tpu.memory_space<vmem>>, vector<2x8x16xf32>
    tpu.vector_store %arg17[%c0_229, %c8_230, %c0_231], %390 {strides = array<i32>} : memref<2x24x32xf32, #tpu.memory_space<vmem>>, vector<2x8x16xf32>,
    %cst_232 = arith.constant 0.000000e+00 : f32
    %392 = vector.broadcast %cst_232 : f32 to vector<16x16xf32>
    %c0_233 = arith.constant 0 : index
    %c4_234 = arith.constant 4 : index
    %c0_235 = arith.constant 0 : index
    %393 = vector.load %arg17[%c0_233, %c4_234, %c0_235] : memref<2x24x32xf32, #tpu.memory_space<vmem>>, vector<2x8x16xf32>
    %394 = vector.shape_cast %393 : vector<2x8x16xf32> to vector<16x16xf32>
    %395 = arith.truncf %394 : vector<16x16xf32> to vector<16x16xbf16>
    %c0_236 = arith.constant 0 : index
    %c0_237 = arith.constant 0 : index
    %c0_238 = arith.constant 0 : index
    %396 = vector.load %arg12[%c0_236, %c0_237, %c0_238] : memref<3x16x16xbf16, #tpu.memory_space<vmem>>, vector<1x16x16xbf16>
    %397 = vector.shape_cast %396 : vector<1x16x16xbf16> to vector<16x16xbf16>
    %cst_239 = arith.constant dense<0.000000e+00> : vector<16x16xf32>
    %398 = tpu.matmul %395, %397, %cst_239 {dimension_numbers = #tpu.dot_dimension_numbers<[1], [0], [0], [1], [0, 0, 1, 1], [], []>} : vector<16x16xbf16>, vector<16x16xbf16>, vector<16x16xf32> -> vector<16x16xf32>
    %399 = arith.addf %392, %398 : vector<16x16xf32>
    %c0_240 = arith.constant 0 : index
    %c8_241 = arith.constant 8 : index
    %c0_242 = arith.constant 0 : index
    %400 = vector.load %arg17[%c0_240, %c8_241, %c0_242] : memref<2x24x32xf32, #tpu.memory_space<vmem>>, vector<2x8x16xf32>
    %401 = vector.shape_cast %400 : vector<2x8x16xf32> to vector<16x16xf32>
    %402 = arith.truncf %401 : vector<16x16xf32> to vector<16x16xbf16>
    %c1_243 = arith.constant 1 : index
    %c0_244 = arith.constant 0 : index
    %c0_245 = arith.constant 0 : index
    %403 = vector.load %arg12[%c1_243, %c0_244, %c0_245] : memref<3x16x16xbf16, #tpu.memory_space<vmem>>, vector<1x16x16xbf16>
    %404 = vector.shape_cast %403 : vector<1x16x16xbf16> to vector<16x16xbf16>
    %cst_246 = arith.constant dense<0.000000e+00> : vector<16x16xf32>
    %405 = tpu.matmul %402, %404, %cst_246 {dimension_numbers = #tpu.dot_dimension_numbers<[1], [0], [0], [1], [0, 0, 1, 1], [], []>} : vector<16x16xbf16>, vector<16x16xbf16>, vector<16x16xf32> -> vector<16x16xf32>
    %406 = arith.addf %399, %405 : vector<16x16xf32>
    %c0_247 = arith.constant 0 : index
    %c12_248 = arith.constant 12 : index
    %c0_249 = arith.constant 0 : index
    %407 = vector.load %arg17[%c0_247, %c12_248, %c0_249] : memref<2x24x32xf32, #tpu.memory_space<vmem>>, vector<2x8x16xf32>
    %408 = vector.shape_cast %407 : vector<2x8x16xf32> to vector<16x16xf32>
    %409 = arith.truncf %408 : vector<16x16xf32> to vector<16x16xbf16>
    %c2_250 = arith.constant 2 : index
    %c0_251 = arith.constant 0 : index
    %c0_252 = arith.constant 0 : index
    %410 = vector.load %arg12[%c2_250, %c0_251, %c0_252] : memref<3x16x16xbf16, #tpu.memory_space<vmem>>, vector<1x16x16xbf16>
    %411 = vector.shape_cast %410 : vector<1x16x16xbf16> to vector<16x16xbf16>
    %cst_253 = arith.constant dense<0.000000e+00> : vector<16x16xf32>
    %412 = tpu.matmul %409, %411, %cst_253 {dimension_numbers = #tpu.dot_dimension_numbers<[1], [0], [0], [1], [0, 0, 1, 1], [], []>} : vector<16x16xbf16>, vector<16x16xbf16>, vector<16x16xf32> -> vector<16x16xf32>
    %413 = arith.addf %406, %412 : vector<16x16xf32>
    %c0_254 = arith.constant 0 : index
    %c0_255 = arith.constant 0 : index
    %414 = vector.load %arg13[%c0_254, %c0_255] : memref<1x16xf32, #tpu.memory_space<vmem>>, vector<1x16xf32>
    %415 = vector.broadcast %414 : vector<1x16xf32> to vector<16x16xf32>
    %416 = arith.addf %413, %415 : vector<16x16xf32>
    %417 = arith.addf %416, %283 : vector<16x16xf32>
    %418 = vector.shape_cast %417 : vector<16x16xf32> to vector<2x8x16xf32>
    %c0_256 = arith.constant 0 : index
    %c0_257 = arith.constant 0 : index
    %c0_258 = arith.constant 0 : index
    %419 = vector.load %arg16[%c0_256, %c0_257, %c0_258] : memref<2x8x16xf32, #tpu.memory_space<vmem>>, vector<2x8x16xf32>
    tpu.vector_store %arg16[%c0_256, %c0_257, %c0_258], %418 {strides = array<i32>} : memref<2x8x16xf32, #tpu.memory_space<vmem>>, vector<2x8x16xf32>,
    return
  }
  func.func @transform_0(%arg0: i32) -> (i32, i32, i32) {
    %c0_i32 = arith.constant 0 : i32
    %c0_i32_0 = arith.constant 0 : i32
    %c0_i32_1 = arith.constant 0 : i32
    return %arg0, %c0_i32, %c0_i32_0 : i32, i32, i32
  }
  func.func @transform_1(%arg0: i32) -> (i32, i32, i32) {
    %c0_i32 = arith.constant 0 : i32
    %c0_i32_0 = arith.constant 0 : i32
    %c0_i32_1 = arith.constant 0 : i32
    %c0_i32_2 = arith.constant 0 : i32
    return %c0_i32, %c0_i32_0, %c0_i32_1 : i32, i32, i32
  }
  func.func @transform_2(%arg0: i32) -> (i32, i32) {
    %c0_i32 = arith.constant 0 : i32
    %c0_i32_0 = arith.constant 0 : i32
    %c0_i32_1 = arith.constant 0 : i32
    return %c0_i32, %c0_i32_0 : i32, i32
  }
  func.func @transform_3(%arg0: i32) -> (i32, i32, i32) {
    %c0_i32 = arith.constant 0 : i32
    %c0_i32_0 = arith.constant 0 : i32
    %c0_i32_1 = arith.constant 0 : i32
    %c0_i32_2 = arith.constant 0 : i32
    return %c0_i32, %c0_i32_0, %c0_i32_1 : i32, i32, i32
  }
  func.func @transform_4(%arg0: i32) -> (i32, i32) {
    %c0_i32 = arith.constant 0 : i32
    %c0_i32_0 = arith.constant 0 : i32
    %c0_i32_1 = arith.constant 0 : i32
    return %c0_i32, %c0_i32_0 : i32, i32
  }
  func.func @transform_5(%arg0: i32) -> (i32, i32, i32) {
    %c0_i32 = arith.constant 0 : i32
    %c0_i32_0 = arith.constant 0 : i32
    %c0_i32_1 = arith.constant 0 : i32
    %c0_i32_2 = arith.constant 0 : i32
    return %c0_i32, %c0_i32_0, %c0_i32_1 : i32, i32, i32
  }
  func.func @transform_6(%arg0: i32) -> (i32, i32) {
    %c0_i32 = arith.constant 0 : i32
    %c0_i32_0 = arith.constant 0 : i32
    %c0_i32_1 = arith.constant 0 : i32
    return %c0_i32, %c0_i32_0 : i32, i32
  }
  func.func @transform_7(%arg0: i32) -> (i32, i32, i32) {
    %c0_i32 = arith.constant 0 : i32
    %c0_i32_0 = arith.constant 0 : i32
    %c0_i32_1 = arith.constant 0 : i32
    %c0_i32_2 = arith.constant 0 : i32
    return %c0_i32, %c0_i32_0, %c0_i32_1 : i32, i32, i32
  }
  func.func @transform_8(%arg0: i32) -> (i32, i32) {
    %c0_i32 = arith.constant 0 : i32
    %c0_i32_0 = arith.constant 0 : i32
    %c0_i32_1 = arith.constant 0 : i32
    return %c0_i32, %c0_i32_0 : i32, i32
  }
  func.func @transform_9(%arg0: i32) -> (i32, i32, i32) {
    %c0_i32 = arith.constant 0 : i32
    %c0_i32_0 = arith.constant 0 : i32
    %c0_i32_1 = arith.constant 0 : i32
    %c0_i32_2 = arith.constant 0 : i32
    return %c0_i32, %c0_i32_0, %c0_i32_1 : i32, i32, i32
  }
  func.func @transform_10(%arg0: i32) -> (i32, i32) {
    %c0_i32 = arith.constant 0 : i32
    %c0_i32_0 = arith.constant 0 : i32
    %c0_i32_1 = arith.constant 0 : i32
    return %c0_i32, %c0_i32_0 : i32, i32
  }
  func.func @transform_11(%arg0: i32) -> (i32, i32, i32) {
    %c0_i32 = arith.constant 0 : i32
    %c0_i32_0 = arith.constant 0 : i32
    %c0_i32_1 = arith.constant 0 : i32
    %c0_i32_2 = arith.constant 0 : i32
    return %c0_i32, %c0_i32_0, %c0_i32_1 : i32, i32, i32
  }
  func.func @transform_12(%arg0: i32) -> (i32, i32) {
    %c0_i32 = arith.constant 0 : i32
    %c0_i32_0 = arith.constant 0 : i32
    %c0_i32_1 = arith.constant 0 : i32
    return %c0_i32, %c0_i32_0 : i32, i32
  }
  func.func @transform_13(%arg0: i32) -> (i32, i32) {
    %c0_i32 = arith.constant 0 : i32
    %c0_i32_0 = arith.constant 0 : i32
    %c0_i32_1 = arith.constant 0 : i32
    return %c0_i32, %c0_i32_0 : i32, i32
  }
  func.func @transform_14(%arg0: i32) -> (i32, i32) {
    %c0_i32 = arith.constant 0 : i32
    %c0_i32_0 = arith.constant 0 : i32
    %c0_i32_1 = arith.constant 0 : i32
    return %c0_i32, %c0_i32_0 : i32, i32
  }
  func.func @transform_15(%arg0: i32) -> (i32, i32, i32) {
    %c0_i32 = arith.constant 0 : i32
    %c0_i32_0 = arith.constant 0 : i32
    %c0_i32_1 = arith.constant 0 : i32
    return %arg0, %c0_i32, %c0_i32_0 : i32, i32, i32
  }
}

</mosaic_0001>

<bundles_post_ra>
// kernel: ts_encoder_a_forward.2
= control target key start
LH: loop header
LB: loop body
LE: loop exit
PB: predicated region body
PF: predicated region fallthrough
CT: control target
= control target key end

     0   :  { %v552_v0 = vmov 0   ;;  %v553_v5 = vmov 0.0   ;;  %vm554_vm0 = vmmov 0   ;;  %vm149_vm1 = vcmask 125952   ;;  %s804_s1 = inlined_call_operand.vmem [shape: f32[16,4,1], index: 1, kind: input, shape index: {}]   ;;  %s805_s3 = inlined_call_operand.vmem [shape: bf16[16,32], index: 3, kind: input, shape index: {}]   ;;  %s806_s0 = inlined_call_operand.vmem [shape: f32[16,4,16], index: 0, kind: input, shape index: {}]   ;;  %s807_s2 = inlined_call_operand.vmem [shape: f32[16,1], index: 2, kind: input, shape index: {}]   ;;  %s808_s4 = inlined_call_operand.vmem [shape: f32[1,32], index: 4, kind: input, shape index: {}]   ;;  %s809_s5 = inlined_call_operand.vmem [shape: f32[16,32], index: 5, kind: output, shape index: {}]  }
   0x1   :  { %550 = vset.pattern.permute.xlu1 %v552_v0  ;;  %549 = vset.pattern.permute.xlu0 %v552_v0  ;;  %v45_v1 = vld [vmem:[%s804_s1 + $0x20] sm:$0xf]  ;;  %v46_v3 = vld [vmem:[%s804_s1 + $0x24] sm:$0xf]  ;;  %v47_v6 = vld [vmem:[%s804_s1 + $0x28] sm:$0xf] }
   0x2   :  { %v37_v2 = vld [vmem:[%s804_s1] sm:$0xf]  ;;  %95 = vperm.xlu1 %550, %v45_v1   ;;  %v38_v4 = vld [vmem:[%s804_s1 + $0x4] sm:$0xf]  ;;  %540 = vmatprep.subr.bf16.mxu0 %v553_v5  ;;  %v39_v7 = vld [vmem:[%s804_s1 + $0x8] sm:$0xf] }
   0x3   :  { %55 = vperm.xlu0 %549, %v37_v2   ;;  %v48_v8 = vld [vmem:[%s804_s1 + $0x2c] sm:$0xf]  ;;  %v49_v10 = vld [vmem:[%s804_s1 + $0x30] sm:$0xf]  ;;  %v50_v12 = vld [vmem:[%s804_s1 + $0x34] sm:$0xf]  ;;  %542 = vmatprep.mubr.msk.bf16.mxu0 %vm554_vm0, %v553_v5 }
   0x4   :  { %v40_v9 = vld [vmem:[%s804_s1 + $0xc] sm:$0xf]  ;;  %v41_v11 = vld [vmem:[%s804_s1 + $0x10] sm:$0xf]  ;;  %v42_v13 = vld [vmem:[%s804_s1 + $0x14] sm:$0xf] }
   0x5   :  { %v51_v14 = vld [vmem:[%s804_s1 + $0x38] sm:$0xf]  ;;  %v52_v16 = vld [vmem:[%s804_s1 + $0x3c] sm:$0xf]  ;;  %v551_v18 = vld [vmem:[%s805_s3] sm:$0xff]   ;;  %vm342_vm4 = vcmask 1041409  }
   0x6   :  { %100 = vperm.xlu1 %550, %v46_v3   ;;  %v43_v15 = vld [vmem:[%s804_s1 + $0x18] sm:$0xf]  ;;  %v44_v17 = vld [vmem:[%s804_s1 + $0x1c] sm:$0xf]  ;;  %541 = vmatpush3.bf16.msra.mxu0 %v551_v18  ;;  %v29_v19 = vld [vmem:[%s806_s0 + $0x20] sm:$0xf] }
   0x7   :  { %60 = vperm.xlu0 %549, %v38_v4   ;;  %v21_v20 = vld [vmem:[%s806_s0] sm:$0xf]  ;;  %v30_v25 = vld [vmem:[%s806_s0 + $0x24] sm:$0xf]  ;;  %v31_v37 = vld [vmem:[%s806_s0 + $0x28] sm:$0xf] }
   0x8   :  { %v22_v26 = vld [vmem:[%s806_s0 + $0x4] sm:$0xf]  ;;  %v23_v38 = vld [vmem:[%s806_s0 + $0x8] sm:$0xf]  ;;  %v32_v53 = vld [vmem:[%s806_s0 + $0x2c] sm:$0xf] }
   0x9   :  { %v24_v54 = vld [vmem:[%s806_s0 + $0xc] sm:$0xf]  ;;  %vm344_vm7 = vcmask 1042434   ;;  %vm346_vm12 = vcmask 1043459   ;;  %vm348_vm13 = vcmask 1044484   ;;  %vm350_vm14 = vcmask 1045509  }
   0xa   :  { %105 = vperm.xlu1 %550, %v47_v6  }
   0xb   :  { %65 = vperm.xlu0 %549, %v39_v7  }
   0xe   :  { %110 = vperm.xlu1 %550, %v48_v8  }
   0xf   :  { %70 = vperm.xlu0 %549, %v40_v9  }
  0x12   :  { %115 = vperm.xlu1 %550, %v49_v10  }
  0x13   :  { %75 = vperm.xlu0 %549, %v41_v11  }
  0x16   :  { %120 = vperm.xlu1 %550, %v50_v12  }
  0x17   :  { %80 = vperm.xlu0 %549, %v42_v13  }
  0x1a   :  { %125 = vperm.xlu1 %550, %v51_v14  }
  0x1b   :  { %85 = vperm.xlu0 %549, %v43_v15  }
  0x1e   :  { %130 = vperm.xlu1 %550, %v52_v16  }
  0x1f   :  { %90 = vperm.xlu0 %549, %v44_v17  }
  0x81   :  { %v96_v21 = vpop.permute.xlu1 %95 }
  0x82   :  { %v56_v22 = vpop.permute.xlu0 %55  ;;  %v141_v23 = vmul.f32 %v96_v21, %v29_v19 }
  0x83   :  { %v133_v24 = vmul.f32 %v56_v22, %v21_v20 }
  0x84   :  { %v206_v27 = vsel %vm149_vm1, %v141_v23, 0.0 }
  0x85   :  { %v150_v28 = vsel %vm149_vm1, %v133_v24, 0.0  ;;  %v207_v29 = vrot.slane %v206_v27, 4  ;;  %v101_v31 = vpop.permute.xlu1 %100 }
  0x86   :  { %v151_v30 = vrot.slane %v150_v28, 4  ;;  %v61_v32 = vpop.permute.xlu0 %60  ;;  %v142_v33 = vmul.f32 %v101_v31, %v30_v25 }
  0x87   :  { %v134_v34 = vmul.f32 %v61_v32, %v22_v26  ;;  %v208_v35 = vadd.f32 %v207_v29, %v206_v27  ;;  %v33_v29 = vld [vmem:[%s806_s0 + $0x30] sm:$0xf] }
  0x88   :  { %v152_v36 = vadd.f32 %v151_v30, %v150_v28  ;;  %v213_v39 = vsel %vm149_vm1, %v142_v33, 0.0 }
  0x89   :  { %v157_v40 = vsel %vm149_vm1, %v134_v34, 0.0  ;;  %v209_v41 = vrot.slane %v208_v35, 2  ;;  %v214_v43 = vrot.slane %v213_v39, 4  ;;  %v106_v45 = vpop.permute.xlu1 %105  ;;  %v25_v34 = vld [vmem:[%s806_s0 + $0x10] sm:$0xf] }
  0x8a   :  { %v153_v42 = vrot.slane %v152_v36, 2  ;;  %v158_v44 = vrot.slane %v157_v40, 4  ;;  %v66_v46 = vpop.permute.xlu0 %65  ;;  %v143_v47 = vmul.f32 %v106_v45, %v31_v37 }
  0x8b   :  { %v135_v48 = vmul.f32 %v66_v46, %v23_v38  ;;  %v210_v49 = vadd.f32 %v209_v41, %v208_v35  ;;  %v215_v51 = vadd.f32 %v214_v43, %v213_v39 }
  0x8c   :  { %v154_v50 = vadd.f32 %v153_v42, %v152_v36  ;;  %v159_v52 = vadd.f32 %v158_v44, %v157_v40  ;;  %v220_v55 = vsel %vm149_vm1, %v143_v47, 0.0 }
  0x8d   :  { %v164_v56 = vsel %vm149_vm1, %v135_v48, 0.0  ;;  %v211_v57 = vrot.slane %v210_v49, 1  ;;  %v216_v59 = vrot.slane %v215_v51, 2  ;;  %v111_v61 = vpop.permute.xlu1 %110  ;;  %v221_v63 = vrot.slane %v220_v55, 4  ;;  %v34_v48 = vld [vmem:[%s806_s0 + $0x34] sm:$0xf] }
  0x8e   :  { %v155_v58 = vrot.slane %v154_v50, 1  ;;  %v160_v60 = vrot.slane %v159_v52, 2  ;;  %v71_v62 = vpop.permute.xlu0 %70  ;;  %v165_v0 = vrot.slane %v164_v56, 4  ;;  %v144_v1 = vmul.f32 %v111_v61, %v32_v53 }
  0x8f   :  { %v136_v2 = vmul.f32 %v71_v62, %v24_v54  ;;  %v212_v3 = vadd.f32 %v211_v57, %v210_v49  ;;  %v217_v6 = vadd.f32 %v216_v59, %v215_v51  ;;  %v222_v8 = vadd.f32 %v221_v63, %v220_v55  ;;  %v26_v54 = vld [vmem:[%s806_s0 + $0x14] sm:$0xf] }
  0x90   :  { %v156_v4 = vadd.f32 %v155_v58, %v154_v50  ;;  %v161_v7 = vadd.f32 %v160_v60, %v159_v52  ;;  %v166_v9 = vadd.f32 %v165_v0, %v164_v56  ;;  %v227_v10 = vsel %vm149_vm1, %v144_v1, 0.0 }
  0x91   :  { %v171_v11 = vsel %vm149_vm1, %v136_v2, 0.0  ;;  %vm270_vm2 = vcmp.ne.f32.partialorder %v212_v3, %v212_v3  ;;  %v218_v12 = vrot.slane %v217_v6, 1  ;;  %v116_v21 = vpop.permute.xlu1 %115  ;;  %v223_v23 = vrot.slane %v222_v8, 2 }
  0x92   :  { %vm262_vm3 = vcmp.ne.f32.partialorder %v156_v4, %v156_v4  ;;  %v162_v13 = vrot.slane %v161_v7, 1  ;;  %v286_v14 = vsel %vm270_vm2, 0.0, %v212_v3  ;;  %v527_v15 = vsel %vm270_vm2, 1.0, %v553_v5  ;;  %v76_v22 = vpop.permute.xlu0 %75 }
  0x93   :  { %v278_v16 = vsel %vm262_vm3, 0.0, %v156_v4  ;;  %v386_v17 = vpack.c.bf16 %v286_v14, %v286_v14  ;;  %v219_v19 = vadd.f32 %v218_v12, %v217_v6  ;;  %v167_v24 = vrot.slane %v166_v9, 2 }
  0x94   :  { %v378_v18 = vpack.c.bf16 %v278_v16, %v278_v16  ;;  %v163_v20 = vadd.f32 %v162_v13, %v161_v7  ;;  %v228_v25 = vrot.slane %v227_v10, 4  ;;  %v172_v26 = vrot.slane %v171_v11, 4 }
  0x95   :  { %v427_v27 = vunpack.c.l.b16 %v386_v17  ;;  %v519_v28 = vsel %vm262_vm3, 1.0, %v553_v5  ;;  %vm271_vm5 = vcmp.ne.f32.partialorder %v219_v19, %v219_v19  ;;  %v224_v39 = vadd.f32 %v223_v23, %v222_v8  ;;  %v121_v47 = vpop.permute.xlu1 %120 }
  0x96   :  { %vm263_vm6 = vcmp.ne.f32.partialorder %v163_v20, %v163_v20  ;;  %v287_v30 = vsel %vm271_vm5, 0.0, %v219_v19  ;;  %v528_v31 = vsel %vm271_vm5, 1.0, %v553_v5  ;;  %v419_v35 = vunpack.c.l.b16 %v378_v18  ;;  %v81_v49 = vpop.permute.xlu0 %80 }
  0x97   :  { %v279_v32 = vsel %vm263_vm6, 0.0, %v163_v20  ;;  %v520_v33 = vsel %vm263_vm6, 1.0, %v553_v5  ;;  %v683_v36 = vsel %vm342_vm4, %v528_v31, %v527_v15  ;;  %v387_v37 = vpack.c.bf16 %v287_v30, %v287_v30 }
  0x98   :  { %v379_v38 = vpack.c.bf16 %v279_v32, %v279_v32  ;;  %v168_v40 = vadd.f32 %v167_v24, %v166_v9  ;;  %v229_v41 = vadd.f32 %v228_v25, %v227_v10  ;;  %v173_v42 = vadd.f32 %v172_v26, %v171_v11  ;;  %v36_v32 = vld [vmem:[%s806_s0 + $0x3c] sm:$0xf] }
  0x99   :  { %v428_v43 = vunpack.c.l.b16 %v387_v37  ;;  %v686_v44 = vsel %vm342_vm4, %v520_v33, %v519_v28  ;;  %v145_v45 = vmul.f32 %v116_v21, %v33_v29  ;;  %v137_v46 = vmul.f32 %v76_v22, %v25_v34  ;;  %v126_v10 = vpop.permute.xlu1 %125  ;;  %v35_v22 = vld [vmem:[%s806_s0 + $0x38] sm:$0xf] }
  0x9a   :  { %v225_v50 = vrot.slane %v224_v39, 1  ;;  %v169_v51 = vrot.slane %v168_v40, 1  ;;  %v230_v52 = vrot.slane %v229_v41, 2  ;;  %v174_v53 = vrot.slane %v173_v42, 2  ;;  %v86_v11 = vpop.permute.xlu0 %85 }
  0x9b   :  { %v442_v55 = vsel %vm342_vm4, %v428_v43, %v427_v27  ;;  %v420_v56 = vunpack.c.l.b16 %v379_v38  ;;  %v234_v57 = vsel %vm149_vm1, %v145_v45, 0.0  ;;  %v178_v58 = vsel %vm149_vm1, %v137_v46, 0.0  ;;  %v27_v27 = vld [vmem:[%s806_s0 + $0x18] sm:$0xf] }
  0x9c   :  { %v226_v59 = vadd.f32 %v225_v50, %v224_v39  ;;  %v170_v60 = vadd.f32 %v169_v51, %v168_v40  ;;  %v231_v61 = vadd.f32 %v230_v52, %v229_v41  ;;  %v175_v62 = vadd.f32 %v174_v53, %v173_v42  ;;  %v28_v40 = vld [vmem:[%s806_s0 + $0x1c] sm:$0xf] }
  0x9d   :  { %v235_v63 = vrot.slane %v234_v57, 4  ;;  %v179_v0 = vrot.slane %v178_v58, 4  ;;  %v146_v1 = vmul.f32 %v121_v47, %v34_v48  ;;  %v138_v2 = vmul.f32 %v81_v49, %v26_v54  ;;  %v131_v38 = vpop.permute.xlu1 %130 }
  0x9e   :  { %vm272_vm8 = vcmp.ne.f32.partialorder %v226_v59, %v226_v59  ;;  %vm264_vm9 = vcmp.ne.f32.partialorder %v170_v60, %v170_v60  ;;  %v232_v3 = vrot.slane %v231_v61, 1  ;;  %v176_v4 = vrot.slane %v175_v62, 1  ;;  %v91_v39 = vpop.permute.xlu0 %90 }
  0x9f   :  { %v435_v6 = vsel %vm342_vm4, %v420_v56, %v419_v35  ;;  %v288_v7 = vsel %vm272_vm8, 0.0, %v226_v59  ;;  %v699_v8 = vsel %vm272_vm8, 1.0, %v553_v5  ;;  %v280_v9 = vsel %vm264_vm9, 0.0, %v170_v60 }
  0xa0   :  { %v388_v12 = vpack.c.bf16 %v288_v7, %v288_v7  ;;  %v380_v13 = vpack.c.bf16 %v280_v9, %v280_v9  ;;  %v233_v14 = vadd.f32 %v232_v3, %v231_v61  ;;  %v177_v15 = vadd.f32 %v176_v4, %v175_v62 }
  0xa1   :  { %v236_v16 = vadd.f32 %v235_v63, %v234_v57  ;;  %v180_v17 = vadd.f32 %v179_v0, %v178_v58  ;;  %v241_v18 = vsel %vm149_vm1, %v146_v1, 0.0  ;;  %v185_v19 = vsel %vm149_vm1, %v138_v2, 0.0 }
  0xa2   :  { %v429_v20 = vunpack.c.l.b16 %v388_v12  ;;  %v421_v21 = vunpack.c.l.b16 %v380_v13  ;;  %vm273_vm10 = vcmp.ne.f32.partialorder %v233_v14, %v233_v14  ;;  %vm265_vm11 = vcmp.ne.f32.partialorder %v177_v15, %v177_v15 }
  0xa3   :  { %v709_v23 = vsel %vm264_vm9, 1.0, %v553_v5  ;;  %v289_v24 = vsel %vm273_vm10, 0.0, %v233_v14  ;;  %v712_v25 = vsel %vm273_vm10, 1.0, %v553_v5  ;;  %v281_v26 = vsel %vm265_vm11, 0.0, %v177_v15 }
  0xa4   :  { %v718_v28 = vsel %vm344_vm7, %v429_v20, %v442_v55  ;;  %v721_v29 = vsel %vm344_vm7, %v421_v21, %v435_v6  ;;  %v389_v30 = vpack.c.bf16 %v289_v24, %v289_v24  ;;  %v724_v31 = vsel %vm265_vm11, 1.0, %v553_v5 }
  0xa5   :  { %v237_v33 = vrot.slane %v236_v16, 2  ;;  %v181_v34 = vrot.slane %v180_v17, 2  ;;  %v242_v35 = vrot.slane %v241_v18, 4  ;;  %v186_v37 = vrot.slane %v185_v19, 4 }
  0xa6   :  { %v732_v41 = vunpack.c.l.b16 %v389_v30  ;;  %v381_v42 = vpack.c.bf16 %v281_v26, %v281_v26  ;;  %v147_v43 = vmul.f32 %v126_v10, %v35_v22  ;;  %v139_v45 = vmul.f32 %v86_v11, %v27_v27 }
  0xa7   :  { %v238_v46 = vadd.f32 %v237_v33, %v236_v16  ;;  %v182_v47 = vadd.f32 %v181_v34, %v180_v17  ;;  %v243_v48 = vadd.f32 %v242_v35, %v241_v18  ;;  %v187_v49 = vadd.f32 %v186_v37, %v185_v19 }
  0xa8   :  { %v248_v50 = vsel %vm149_vm1, %v147_v43, 0.0  ;;  %v192_v51 = vsel %vm149_vm1, %v139_v45, 0.0  ;;  %v148_v52 = vmul.f32 %v131_v38, %v36_v32  ;;  %v140_v53 = vmul.f32 %v91_v39, %v28_v40 }
  0xa9   :  { %v239_v54 = vrot.slane %v238_v46, 1  ;;  %v183_v55 = vrot.slane %v182_v47, 1  ;;  %v244_v56 = vrot.slane %v243_v48, 2  ;;  %v188_v57 = vrot.slane %v187_v49, 2 }
  0xaa   :  { %v249_v58 = vrot.slane %v248_v50, 4  ;;  %v193_v59 = vrot.slane %v192_v51, 4  ;;  %v255_v60 = vsel %vm149_vm1, %v148_v52, 0.0  ;;  %v199_v61 = vsel %vm149_vm1, %v140_v53, 0.0 }
  0xab   :  { %v240_v62 = vadd.f32 %v239_v54, %v238_v46  ;;  %v184_v63 = vadd.f32 %v183_v55, %v182_v47  ;;  %v245_v0 = vadd.f32 %v244_v56, %v243_v48  ;;  %v189_v1 = vadd.f32 %v188_v57, %v187_v49 }
  0xac   :  { %v250_v2 = vadd.f32 %v249_v58, %v248_v50  ;;  %v194_v3 = vadd.f32 %v193_v59, %v192_v51  ;;  %v256_v4 = vrot.slane %v255_v60, 4  ;;  %v200_v6 = vrot.slane %v199_v61, 4 }
  0xad   :  { %vm274_vm15 = vcmp.ne.f32.partialorder %v240_v62, %v240_v62  ;;  %vm266_vm0 = vcmp.ne.f32.partialorder %v184_v63, %v184_v63  ;;  %v246_v7 = vrot.slane %v245_v0, 1  ;;  %v190_v9 = vrot.slane %v189_v1, 1 }
  0xae   :  { %vm352_vm2 = vcmask 1046534   ;;  %v290_v10 = vsel %vm274_vm15, 0.0, %v240_v62  ;;  %v282_v11 = vsel %vm266_vm0, 0.0, %v184_v63  ;;  %v251_v12 = vrot.slane %v250_v2, 2 }
  0xaf   :  { %v195_v13 = vrot.slane %v194_v3, 2  ;;  %v390_v14 = vpack.c.bf16 %v290_v10, %v290_v10  ;;  %v382_v15 = vpack.c.bf16 %v282_v11, %v282_v11  ;;  %v247_v16 = vadd.f32 %v246_v7, %v245_v0 }
  0xb0   :  { %v191_v17 = vadd.f32 %v190_v9, %v189_v1  ;;  %v252_v18 = vadd.f32 %v251_v12, %v250_v2  ;;  %v257_v20 = vadd.f32 %v256_v4, %v255_v60  ;;  %v201_v21 = vadd.f32 %v200_v6, %v199_v61 }
  0xb1   :  { %v196_v19 = vadd.f32 %v195_v13, %v194_v3  ;;  %v422_v22 = vunpack.c.l.b16 %v381_v42  ;;  %v740_v24 = vunpack.c.l.b16 %v390_v14  ;;  %v423_v26 = vunpack.c.l.b16 %v382_v15 }
  0xb2   :  { %vm275_vm1 = vcmp.ne.f32.partialorder %v247_v16, %v247_v16  ;;  %vm354_vm3 = vcmask 1047559   ;;  %v253_v27 = vrot.slane %v252_v18, 1  ;;  %v258_v32 = vrot.slane %v257_v20, 2 }
  0xb3   :  { %v197_v30 = vrot.slane %v196_v19, 1  ;;  %v202_v33 = vrot.slane %v201_v21, 2  ;;  %vm365_vm4 = vcmask 130048   ;;  %v291_v34 = vsel %vm275_vm1, 0.0, %v247_v16 }
  0xb4   :  { %v531_v35 = vsel %vm274_vm15, 1.0, %v553_v5  ;;  %v532_v37 = vsel %vm275_vm1, 1.0, %v553_v5  ;;  %vm267_vm5 = vcmp.ne.f32.partialorder %v191_v17, %v191_v17  ;;  %v254_v38 = vadd.f32 %v253_v27, %v252_v18 }
  0xb5   :  { %v259_v39 = vadd.f32 %v258_v32, %v257_v20  ;;  %v203_v40 = vadd.f32 %v202_v33, %v201_v21  ;;  %v357_v42 = vsel %vm344_vm7, %v699_v8, %v683_v36  ;;  %v198_v43 = vadd.f32 %v197_v30, %v196_v19 }
  0xb6   :  { %v358_v45 = vsel %vm346_vm12, %v712_v25, %v357_v42  ;;  %v391_v46 = vpack.c.bf16 %v291_v34, %v291_v34  ;;  %v283_v47 = vsel %vm267_vm5, 0.0, %v191_v17  ;;  %vm276_vm6 = vcmp.ne.f32.partialorder %v254_v38, %v254_v38 }
  0xb7   :  { %v260_v48 = vrot.slane %v259_v39, 1  ;;  %v204_v49 = vrot.slane %v203_v40, 1  ;;  %v359_v50 = vsel %vm348_vm13, %v531_v35, %v358_v45  ;;  %v292_v51 = vsel %vm276_vm6, 0.0, %v254_v38 }
  0xb8   :  { %v533_v52 = vsel %vm276_vm6, 1.0, %v553_v5  ;;  %v360_v53 = vsel %vm350_vm14, %v532_v37, %v359_v50  ;;  %v523_v36 = vsel %vm266_vm0, 1.0, %v553_v5  ;;  %v432_v25 = vunpack.c.l.b16 %v391_v46 }
  0xb9   :  { %v261_v8 = vadd.f32 %v260_v48, %v259_v39  ;;  %v361_v54 = vsel %vm352_vm2, %v533_v52, %v360_v53  ;;  %v205_v55 = vadd.f32 %v204_v49, %v203_v40  ;;  %v392_v56 = vpack.c.bf16 %v292_v51, %v292_v51 }
  0xba   :  { %vm268_vm8 = vcmp.ne.f32.partialorder %v198_v43, %v198_v43  ;;  %v524_v57 = vsel %vm267_vm5, 1.0, %v553_v5  ;;  %v345_v58 = vsel %vm344_vm7, %v709_v23, %v686_v44  ;;  %v383_v60 = vpack.c.bf16 %v283_v47, %v283_v47 }
  0xbb   :  { %vm277_vm9 = vcmp.ne.f32.partialorder %v261_v8, %v261_v8  ;;  %vm269_vm10 = vcmp.ne.f32.partialorder %v205_v55, %v205_v55  ;;  %v284_v59 = vsel %vm268_vm8, 0.0, %v198_v43  ;;  %v525_v0 = vsel %vm268_vm8, 1.0, %v553_v5  ;;  %v535_v43 = vld [vmem:[%s808_s4] ss:$0 sm:$0xff] }
  0xbc   :  { %v293_v61 = vsel %vm277_vm9, 0.0, %v261_v8  ;;  %v534_v62 = vsel %vm277_vm9, 1.0, %v553_v5  ;;  %v285_v63 = vsel %vm269_vm10, 0.0, %v205_v55  ;;  %v526_v3 = vsel %vm269_vm10, 1.0, %v553_v5 }
  0xbd   :  { %v362_v1 = vsel %vm354_vm3, %v534_v62, %v361_v54  ;;  %v393_v2 = vpack.c.bf16 %v293_v61, %v293_v61  ;;  %v347_v4 = vsel %vm346_vm12, %v724_v31, %v345_v58  ;;  %v384_v6 = vpack.c.bf16 %v284_v59, %v284_v59 }
  0xbe   :  { %v369_v44 = vsel %vm365_vm4, %v362_v1, -inf  ;;  %v349_v23 = vsel %vm348_vm13, %v523_v36, %v347_v4  ;;  %v385_v7 = vpack.c.bf16 %v285_v63, %v285_v63  ;;  %v433_v9 = vunpack.c.l.b16 %v392_v56 }
  0xbf   :  { %370 = vmax.xlane.f32.xlu1 %v369_v44  ;;  %v351_v10 = vsel %vm350_vm14, %v524_v57, %v349_v23  ;;  %v424_v11 = vunpack.c.l.b16 %v383_v60  ;;  %v437_v12 = vsel %vm346_vm12, %v422_v22, %v721_v29  ;;  %v425_v5 = vunpack.c.l.b16 %v384_v6 }
  0xc0   :  { %v353_v13 = vsel %vm352_vm2, %v525_v0, %v351_v10  ;;  %v426_v14 = vunpack.c.l.b16 %v385_v7  ;;  %v438_v31 = vsel %vm348_vm13, %v423_v26, %v437_v12  ;;  %v434_v15 = vunpack.c.l.b16 %v393_v2 }
  0xc1   :  { %v355_v16 = vsel %vm354_vm3, %v526_v3, %v353_v13  ;;  %v439_v17 = vsel %vm350_vm14, %v424_v11, %v438_v31  ;;  %v444_v18 = vsel %vm346_vm12, %v732_v41, %v718_v28  ;;  %v373_v28 = vld [vmem:[%s807_s2 + $0x8] sm:$0xff]  ;;  %vm512_vm7 = vcmask 261120  }
  0xc2   :  { %v366_v19 = vsel %vm365_vm4, %v355_v16, -inf  ;;  %v440_v20 = vsel %vm352_vm2, %v425_v5, %v439_v17  ;;  %v445_v29 = vsel %vm348_vm13, %v740_v24, %v444_v18  ;;  %v372_v24 = vld [vmem:[%s807_s2] sm:$0xff] }
  0xc3   :  { %367 = vmax.xlane.f32.xlu0 %v366_v19  ;;  %v441_v21 = vsel %vm354_vm3, %v426_v14, %v440_v20  ;;  %v446_v22 = vsel %vm350_vm14, %v432_v25, %v445_v29 }
  0xc4   :  { %v447_v26 = vsel %vm352_vm2, %v433_v9, %v446_v22 }
  0xc5   :  { %v448_v27 = vsel %vm354_vm3, %v434_v15, %v447_v26 }
  0xc6   :  { %v449_v30 = vpack.c.b16 %v448_v27, %v441_v21 }
  0xc8   :  { %543 = vmatmul.mubr.msk.bf16.vlgmr.msra.gmra.mrb[0].mxu0 %vm365_vm4, %v449_v30 }
 0x14c   :  { %v371_v41 = vpop.xlane.xlu1 %370 }
 0x14d   :  { %v375_v32 = vsub.f32 1.0, %v371_v41 }
 0x14f   :  { %v377_v33 = vmul.f32 %v375_v32, %v373_v28 }
 0x150   :  { %v368_v34 = vpop.xlane.xlu0 %367 }
 0x151   :  { %v374_v35 = vsub.f32 1.0, %v368_v34  ;;  %507 = vperm.xlu1 %550, %v377_v33  }
 0x153   :  { %v376_v37 = vmul.f32 %v374_v35, %v372_v24 }
 0x155   :  { %502 = vperm.xlu0 %549, %v376_v37  }
 0x19b   :  { %v493_v38 = vpop.f32.mrb[0].mxu0 }
 0x19c   :  { %v544_v39 = vpop.f32.mrb[1].mxu0  ;;  %v494_v48 = vadd.f32 %v535_v43, %v493_v38 }
 0x19d   :  { %v496_v40 = vpop.f32.mrb[2].mxu0 }
 0x19e   :  { %v545_v42 = vpop.f32.mrb[3].mxu0  ;;  %v497_v45 = vadd.f32 %v535_v43, %v496_v40 }
 0x1d0   :  { %v508_v46 = vpop.permute.xlu1 %507 }
 0x1d1   :  { %v511_v47 = vmul.f32 %v508_v46, %v497_v45 }
 0x1d3   :  { %514 = vst.msk [vmem:[%s809_s5 + $0x8] sm:$0xff] %vm512_vm7, %v511_v47 }
 0x1d4   :  { %v503_v49 = vpop.permute.xlu0 %502 }
 0x1d5   :  { %v510_v50 = vmul.f32 %v503_v49, %v494_v48 }
 0x1d7   :  { %513 = vst.msk [vmem:[%s809_s5] sm:$0xff] %vm512_vm7, %v510_v50 }

// kernel: ts_encoder_a_forward.3
= control target key start
LH: loop header
LB: loop body
LE: loop exit
PB: predicated region body
PF: predicated region fallthrough
CT: control target
= control target key end

     0   :  { %v2109_v1 = vmov 0.0   ;;  %vm2110_vm0 = vmmov 0   ;;  %vm52_vm1 = vcmask 261120   ;;  %s2485_s0 = inlined_call_operand.vmem [shape: f32[2,8,32], index: 0, kind: input, shape index: {}]   ;;  %s2486_s1 = inlined_call_operand.vmem [shape: bf16[3,32,32], index: 1, kind: input, shape index: {}]   ;;  %s2487_s2 = inlined_call_operand.vmem [shape: f32[1,32], index: 2, kind: input, shape index: {}]   ;;  %s2488_s3 = inlined_call_operand.vmem [shape: bf16[3,32,32], index: 3, kind: input, shape index: {}]   ;;  %s2489_s4 = inlined_call_operand.vmem [shape: f32[1,32], index: 4, kind: input, shape index: {}]   ;;  %s2490_s5 = inlined_call_operand.vmem [shape: bf16[3,32,32], index: 5, kind: input, shape index: {}]   ;;  %s2491_s6 = inlined_call_operand.vmem [shape: f32[1,32], index: 6, kind: input, shape index: {}]   ;;  %s2492_s7 = inlined_call_operand.vmem [shape: bf16[3,32,32], index: 7, kind: input, shape index: {}]   ;;  %s2493_s8 = inlined_call_operand.vmem [shape: f32[1,32], index: 8, kind: input, shape index: {}]   ;;  %s2494_s9 = inlined_call_operand.vmem [shape: bf16[3,32,16], index: 9, kind: input, shape index: {}]   ;;  %s2495_s10 = inlined_call_operand.vmem [shape: f32[1,16], index: 10, kind: input, shape index: {}]   ;;  %s2496_s11 = inlined_call_operand.vmem [shape: bf16[3,16,16], index: 11, kind: input, shape index: {}]   ;;  %s2497_s12 = inlined_call_operand.vmem [shape: f32[1,16], index: 12, kind: input, shape index: {}]   ;;  %s2498_s13 = inlined_call_operand.vmem [shape: bf16[32,16], index: 13, kind: input, shape index: {}]   ;;  %s2499_s14 = inlined_call_operand.vmem [shape: f32[1,16], index: 14, kind: input, shape index: {}]   ;;  %s2500_s15 = inlined_call_operand.hbm [shape: f32[2,8,16], index: 15, kind: output, shape index: {}]  }
   0x1   :  { %v2002_v0 = vld [vmem:[%s2486_s1 + $0x10] sm:$0xff]   ;;  %1835 = vmatprep.subr.bf16.mxu1 %v2109_v1  ;;  %v2003_v2 = vld [vmem:[%s2486_s1 + $0x18] sm:$0xff]   ;;  %1851 = vmatprep.subr.bf16.mxu0 %v2109_v1  ;;  %v2207_v3 = vld [vmem:[%s2485_s0] sm:$0xff]  ;;  %53 = vst.msk [vmem:[#allocation2] sm:$0xff] %vm52_vm1, %v2109_v1 }
   0x2   :  { %1836 = vmatpush3.bf16.msra.mxu1 %v2002_v0  ;;  %1839 = vmatprep.mubr.msk.bf16.mxu1 %vm2110_vm0, %v2109_v1  ;;  %v2212_v4 = vld [vmem:[%s2485_s0 + $0x8] sm:$0xff]  ;;  %v2216_v5 = vmul.f32 0.70710677, %v2207_v3  ;;  %54 = vst.msk [vmem:[#allocation2 + $0x18] sm:$0xff] %vm52_vm1, %v2109_v1  ;;  %55 = vst.msk [vmem:[#allocation2 + $0x10] sm:$0xff] %vm52_vm1, %v2109_v1  ;;  %v2005_v9 = vld [vmem:[%s2486_s1 + $0x20] sm:$0xff]  }
   0x3   :  { %1837 = vmatprep.subr.bf16.mxu1 %v2109_v1  ;;  %v2219_v6 = vmul.f32 0.70710677, %v2212_v4  ;;  %56 = vst.msk [vmem:[#allocation2 + $0x28] sm:$0xff] %vm52_vm1, %v2109_v1  ;;  %1855 = vmatprep.mubr.msk.bf16.mxu0 %vm2110_vm0, %v2109_v1  ;;  %v2007_v18 = vld [vmem:[%s2486_s1 + $0x28] sm:$0xff]  }
   0x4   :  { %v63_v7 = vand.u32 2147483647, %v2216_v5  ;;  %1852 = vmatpush3.bf16.msra.mxu0 %v2005_v9 }
   0x5   :  { %v64_v8 = vand.u32 2147483647, %v2219_v6  ;;  %1853 = vmatprep.subr.bf16.mxu0 %v2109_v1 }
   0x6   :  { %1838 = vmatpush3.bf16.msra.mxu1 %v2003_v2  ;;  %v65_v10 = vmul.f32 0.3275911, %v63_v7  ;;  %v91_v12 = vsub.f32 0.0, %v63_v7 }
   0x7   :  { %1843 = vmatprep.subr.bf16.mxu1 %v2109_v1  ;;  %v66_v11 = vmul.f32 0.3275911, %v64_v8  ;;  %v92_v13 = vsub.f32 0.0, %v64_v8 }
   0x8   :  { %v67_v14 = vadd.f32 1.0, %v65_v10  ;;  %v93_v16 = vmul.f32 %v91_v12, %v63_v7  ;;  %1854 = vmatpush3.bf16.msra.mxu0 %v2007_v18 }
   0x9   :  { %v68_v15 = vadd.f32 1.0, %v66_v11  ;;  %v94_v17 = vmul.f32 %v92_v13, %v64_v8  ;;  %1867 = vmatprep.subr.bf16.mxu0 %v2109_v1 }
   0xa   :  { %2037 = vrcp.f32 %v67_v14  ;;  %v95_v19 = vmul.f32 1.442695, %v93_v16 }
   0xb   :  { %v97_v20 = vmul.f32 1.442695, %v94_v17  ;;  %2039 = vrcp.f32 %v68_v15 }
   0xc   :  { %2041 = vpow2.f32 %v95_v19 }
   0xd   :  { %2043 = vpow2.f32 %v97_v20 }
  0x14   :  { %v2038_v21 = vpop.eup %2037 }
  0x15   :  { %v2040_v22 = vpop.eup %2039  ;;  %v73_v23 = vmul.f32 1.0614054, %v2038_v21 }
  0x16   :  { %v74_v24 = vmul.f32 1.0614054, %v2040_v22 }
  0x17   :  { %v75_v25 = vadd.f32 -1.4531521, %v73_v23 }
  0x18   :  { %v76_v26 = vadd.f32 -1.4531521, %v74_v24 }
  0x19   :  { %v77_v27 = vmul.f32 %v2038_v21, %v75_v25 }
  0x1a   :  { %v78_v28 = vmul.f32 %v2040_v22, %v76_v26 }
  0x1b   :  { %v79_v29 = vadd.f32 1.4214138, %v77_v27 }
  0x1c   :  { %v80_v30 = vadd.f32 1.4214138, %v78_v28 }
  0x1d   :  { %v81_v31 = vmul.f32 %v2038_v21, %v79_v29 }
  0x1e   :  { %v82_v32 = vmul.f32 %v2040_v22, %v80_v30 }
  0x1f   :  { %v83_v33 = vadd.f32 -0.28449672, %v81_v31 }
  0x20   :  { %20 = vsyncpa [#allocation4], 0  ;;  %v84_v34 = vadd.f32 -0.28449672, %v82_v32  ;;  %v2042_v38 = vpop.eup %2041  ;;  %vm103_vm2 = vcmp.ge.f32.partialorder %v2216_v5, 0.0  ;;  %vm104_vm3 = vcmp.ge.f32.partialorder %v2219_v6, 0.0 }
  0x21   :  { %v85_v35 = vmul.f32 %v2038_v21, %v83_v33  ;;  %v2044_v40 = vpop.eup %2043  ;;  %v59_v48 = vmul.f32 0.5, %v2207_v3  ;;  %v60_v50 = vmul.f32 0.5, %v2212_v4  ;;  %v2004_v60 = vld [vmem:[%s2486_s1] sm:$0xff]   ;;  %v2006_v0 = vld [vmem:[%s2486_s1 + $0x8] sm:$0xff]   ;;  %v2008_v7 = vld [vmem:[%s2488_s3 + $0x10] sm:$0xff]   ;;  %vm1475_vm14 = vcmask 130048  }
  0x22   :  { %v86_v36 = vmul.f32 %v2040_v22, %v84_v34  ;;  %v2009_v8 = vld [vmem:[%s2488_s3] sm:$0xff]   ;;  %v2010_v9 = vld [vmem:[%s2488_s3 + $0x18] sm:$0xff]   ;;  %v2011_v10 = vld [vmem:[%s2488_s3 + $0x8] sm:$0xff]  }
  0x23   :  { %v87_v37 = vadd.f32 0.2548296, %v85_v35 }
  0x24   :  { %v88_v39 = vadd.f32 0.2548296, %v86_v36 }
  0x25   :  { %v89_v41 = vmul.f32 %v2038_v21, %v87_v37 }
  0x26   :  { %v90_v42 = vmul.f32 %v2040_v22, %v88_v39  ;;  %v1693_v22 = vld [vmem:[%s2487_s2] ss:$0 sm:$0xff] }
  0x27   :  { %v99_v43 = vmul.f32 %v2042_v38, %v89_v41 }
  0x28   :  { %v100_v44 = vmul.f32 %v2044_v40, %v90_v42 }
  0x29   :  { %v101_v45 = vsub.f32 1.0, %v99_v43 }
  0x2a   :  { %v102_v46 = vsub.f32 1.0, %v100_v44 }
  0x2b   :  { %v105_v47 = vsub.f32 0.0, %v101_v45 }
  0x2c   :  { %v106_v49 = vsub.f32 0.0, %v102_v46 }
  0x2d   :  { %v107_v51 = vsel %vm103_vm2, %v101_v45, %v105_v47 }
  0x2e   :  { %v108_v52 = vsel %vm104_vm3, %v102_v46, %v106_v49  ;;  %v109_v53 = vadd.f32 1.0, %v107_v51 }
  0x2f   :  { %v110_v54 = vadd.f32 1.0, %v108_v52 }
  0x30   :  { %v111_v55 = vmul.f32 %v109_v53, %v59_v48 }
  0x31   :  { %v112_v56 = vmul.f32 %v110_v54, %v60_v50 }
  0x32   :  { %113 = vst.msk [vmem:[#allocation2 + $0x8] sm:$0xff] %vm52_vm1, %v111_v55 }
  0x33   :  { %114 = vst.msk [vmem:[#allocation2 + $0x20] sm:$0xff] %vm52_vm1, %v112_v56 }
  0x39   :  { %v122_v57 = vld [vmem:[#allocation2 + $0x8] sm:$0xff] }
  0x3a   :  { %v242_v58 = vld [vmem:[#allocation2 + $0x9] sm:$0xff]  ;;  %v123_v59 = vld [vmem:[#allocation2 + $0x20] sm:$0xff] }
  0x3b   :  { %v243_v61 = vld [vmem:[#allocation2 + $0x21] sm:$0xff]  ;;  %v124_v62 = vpack.c.bf16 %v123_v59, %v122_v57 }
  0x3c   :  { %v244_v63 = vpack.c.bf16 %v243_v61, %v242_v58  ;;  %v115_v2 = vld [vmem:[#allocation2 + $0x7] sm:$0xff]  ;;  %v116_v5 = vld [vmem:[#allocation2 + $0x1f] sm:$0xff] }
  0x3d   :  { %1840 = vmatmul.mubr.msk.bf16.vlgmr.msra.gmra.mrb[0].mxu1 %vm52_vm1, %v124_v62  ;;  %v117_v6 = vpack.c.bf16 %v116_v5, %v115_v2 }
  0x3e   :  { %1856 = vmatmul.mubr.msk.bf16.vlgmr.msra.gmra.mrb[0].mxu0 %vm52_vm1, %v244_v63  ;;  %1844 = vmatpush3.bf16.msra.mxu1 %v2004_v60 }
  0x3f   :  { %1847 = vmatprep.mubr.msk.bf16.mxu1 %vm2110_vm0, %v2109_v1  ;;  %1845 = vmatprep.subr.bf16.mxu1 %v2109_v1 }
  0x40   :  { %1871 = vmatprep.mubr.msk.bf16.mxu0 %vm2110_vm0, %v2109_v1  ;;  %1868 = vmatpush3.bf16.msra.mxu0 %v2009_v8 }
  0x41   :  { %1869 = vmatprep.subr.bf16.mxu0 %v2109_v1 }
  0x42   :  { %1846 = vmatpush3.bf16.msra.mxu1 %v2006_v0 }
  0x43   :  { %1859 = vmatprep.subr.bf16.mxu1 %v2109_v1 }
  0x44   :  { %1870 = vmatpush3.bf16.msra.mxu0 %v2011_v10 }
  0x45   :  { %1848 = vmatmul.mubr.msk.bf16.vlgmr.msra.gmra.mrb[4].mxu1 %vm52_vm1, %v117_v6  ;;  %1883 = vmatprep.subr.bf16.mxu0 %v2109_v1 }
  0x46   :  { %1863 = vmatprep.mubr.msk.bf16.mxu1 %vm2110_vm0, %v2109_v1  ;;  %1860 = vmatpush3.bf16.msra.mxu1 %v2008_v7 }
  0x47   :  { %1861 = vmatprep.subr.bf16.mxu1 %v2109_v1 }
  0x4a   :  { %1862 = vmatpush3.bf16.msra.mxu1 %v2010_v9 }
  0x4b   :  { %1875 = vmatprep.subr.bf16.mxu1 %v2109_v1 }
 0x110   :  { %v179_v11 = vpop.f32.mrb[0].mxu1 }
 0x111   :  { %v299_v12 = vpop.f32.mrb[0].mxu0  ;;  %v1841_v13 = vpop.f32.mrb[1].mxu1 }
 0x112   :  { %v1857_v14 = vpop.f32.mrb[1].mxu0  ;;  %v182_v15 = vpop.f32.mrb[2].mxu1 }
 0x113   :  { %v302_v16 = vpop.f32.mrb[2].mxu0  ;;  %v1842_v17 = vpop.f32.mrb[3].mxu1 }
 0x114   :  { %v1858_v18 = vpop.f32.mrb[3].mxu0 }
 0x118   :  { %v235_v19 = vpop.f32.mrb[4].mxu1 }
 0x119   :  { %v236_v20 = vadd.f32 %v235_v19, %v179_v11  ;;  %v1849_v21 = vpop.f32.mrb[5].mxu1 }
 0x11a   :  { %v238_v23 = vpop.f32.mrb[6].mxu1 }
 0x11b   :  { %v306_v24 = vadd.f32 %v299_v12, %v236_v20  ;;  %v239_v25 = vadd.f32 %v238_v23, %v182_v15  ;;  %v1850_v26 = vpop.f32.mrb[7].mxu1  ;;  %v2012_v20 = vld [vmem:[%s2488_s3 + $0x20] sm:$0xff]  }
 0x11c   :  { %v2013_v26 = vld [vmem:[%s2488_s3 + $0x28] sm:$0xff]  }
 0x11d   :  { %v315_v27 = vadd.f32 %v1693_v22, %v306_v24  ;;  %v307_v28 = vadd.f32 %v302_v16, %v239_v25 }
 0x11f   :  { %v319_v29 = vmul.f32 0.70710677, %v315_v27  ;;  %v316_v30 = vadd.f32 %v1693_v22, %v307_v28  ;;  %v317_v11 = vmul.f32 0.5, %v315_v27 }
 0x121   :  { %v321_v31 = vand.u32 2147483647, %v319_v29  ;;  %v320_v32 = vmul.f32 0.70710677, %v316_v30  ;;  %vm361_vm4 = vcmp.ge.f32.partialorder %v319_v29, 0.0  ;;  %v318_v16 = vmul.f32 0.5, %v316_v30 }
 0x122   :  { %v2014_v30 = vld [vmem:[%s2490_s5 + $0x10] sm:$0xff]  }
 0x123   :  { %v323_v33 = vmul.f32 0.3275911, %v321_v31  ;;  %v322_v34 = vand.u32 2147483647, %v320_v32  ;;  %v349_v38 = vsub.f32 0.0, %v321_v31  ;;  %vm362_vm5 = vcmp.ge.f32.partialorder %v320_v32, 0.0 }
 0x124   :  { %v2016_v32 = vld [vmem:[%s2490_s5 + $0x18] sm:$0xff]  }
 0x125   :  { %v325_v35 = vadd.f32 1.0, %v323_v33  ;;  %v324_v36 = vmul.f32 0.3275911, %v322_v34  ;;  %v350_v39 = vsub.f32 0.0, %v322_v34  ;;  %v351_v41 = vmul.f32 %v349_v38, %v321_v31  ;;  %v2015_v31 = vld [vmem:[%s2490_s5] sm:$0xff]   ;;  %v2017_v33 = vld [vmem:[%s2490_s5 + $0x8] sm:$0xff]  }
 0x127   :  { %2045 = vrcp.f32 %v325_v35  ;;  %v326_v37 = vadd.f32 1.0, %v324_v36  ;;  %v352_v45 = vmul.f32 %v350_v39, %v322_v34  ;;  %v353_v46 = vmul.f32 1.442695, %v351_v41 }
 0x129   :  { %2047 = vrcp.f32 %v326_v37  ;;  %v355_v51 = vmul.f32 1.442695, %v352_v45  ;;  %v1711_v45 = vld [vmem:[%s2489_s4] ss:$0 sm:$0xff] }
 0x12a   :  { %2049 = vpow2.f32 %v353_v46 }
 0x12b   :  { %2051 = vpow2.f32 %v355_v51 }
 0x131   :  { %v2046_v40 = vpop.eup %2045 }
 0x132   :  { %v331_v42 = vmul.f32 1.0614054, %v2046_v40 }
 0x133   :  { %v2048_v43 = vpop.eup %2047 }
 0x134   :  { %v333_v44 = vadd.f32 -1.4531521, %v331_v42  ;;  %v332_v47 = vmul.f32 1.0614054, %v2048_v43  ;;  %v2050_v62 = vpop.eup %2049 }
 0x135   :  { %v2052_v5 = vpop.eup %2051 }
 0x136   :  { %v335_v48 = vmul.f32 %v2046_v40, %v333_v44  ;;  %v334_v49 = vadd.f32 -1.4531521, %v332_v47 }
 0x138   :  { %v337_v50 = vadd.f32 1.4214138, %v335_v48  ;;  %v336_v52 = vmul.f32 %v2048_v43, %v334_v49 }
 0x13a   :  { %v339_v53 = vmul.f32 %v2046_v40, %v337_v50  ;;  %v338_v54 = vadd.f32 1.4214138, %v336_v52 }
 0x13c   :  { %v341_v55 = vadd.f32 -0.28449672, %v339_v53  ;;  %v340_v56 = vmul.f32 %v2048_v43, %v338_v54 }
 0x13e   :  { %v343_v57 = vmul.f32 %v2046_v40, %v341_v55  ;;  %v342_v58 = vadd.f32 -0.28449672, %v340_v56 }
 0x140   :  { %v345_v59 = vadd.f32 0.2548296, %v343_v57  ;;  %v344_v60 = vmul.f32 %v2048_v43, %v342_v58 }
 0x142   :  { %v347_v61 = vmul.f32 %v2046_v40, %v345_v59  ;;  %v346_v63 = vadd.f32 0.2548296, %v344_v60 }
 0x144   :  { %v357_v0 = vmul.f32 %v2050_v62, %v347_v61  ;;  %v348_v2 = vmul.f32 %v2048_v43, %v346_v63 }
 0x146   :  { %v359_v6 = vsub.f32 1.0, %v357_v0  ;;  %v358_v7 = vmul.f32 %v2052_v5, %v348_v2 }
 0x148   :  { %v363_v8 = vsub.f32 0.0, %v359_v6  ;;  %v360_v9 = vsub.f32 1.0, %v358_v7 }
 0x14a   :  { %v365_v10 = vsel %vm361_vm4, %v359_v6, %v363_v8  ;;  %v364_v13 = vsub.f32 0.0, %v360_v9 }
 0x14b   :  { %v367_v12 = vadd.f32 1.0, %v365_v10 }
 0x14c   :  { %v366_v15 = vsel %vm362_vm5, %v360_v9, %v364_v13 }
 0x14d   :  { %v369_v14 = vmul.f32 %v367_v12, %v317_v11  ;;  %v368_v17 = vadd.f32 1.0, %v366_v15 }
 0x14f   :  { %371 = vst.msk [vmem:[#allocation2 + $0x8] sm:$0xff] %vm52_vm1, %v369_v14  ;;  %v370_v18 = vmul.f32 %v368_v17, %v318_v16 }
 0x151   :  { %372 = vst.msk [vmem:[#allocation2 + $0x20] sm:$0xff] %vm52_vm1, %v370_v18 }
 0x156   :  { %v380_v19 = vld [vmem:[#allocation2 + $0x8] sm:$0xff] }
 0x157   :  { %v373_v22 = vld [vmem:[#allocation2 + $0x7] sm:$0xff] }
 0x158   :  { %v381_v21 = vld [vmem:[#allocation2 + $0x20] sm:$0xff]  ;;  %v500_v28 = vld [vmem:[#allocation2 + $0x9] sm:$0xff] }
 0x159   :  { %v374_v23 = vld [vmem:[#allocation2 + $0x1f] sm:$0xff]  ;;  %v382_v24 = vpack.c.bf16 %v381_v21, %v380_v19 }
 0x15a   :  { %v375_v25 = vpack.c.bf16 %v374_v23, %v373_v22  ;;  %v501_v27 = vld [vmem:[#allocation2 + $0x21] sm:$0xff] }
 0x15b   :  { %1864 = vmatmul.mubr.msk.bf16.vlgmr.msra.gmra.mrb[8].mxu1 %vm52_vm1, %v382_v24  ;;  %v502_v29 = vpack.c.bf16 %v501_v27, %v500_v28 }
 0x15c   :  { %1872 = vmatmul.mubr.msk.bf16.vlgmr.msra.gmra.mrb[4].mxu0 %vm52_vm1, %v375_v25  ;;  %1876 = vmatpush3.bf16.msra.mxu1 %v2012_v20 }
 0x15d   :  { %1879 = vmatprep.mubr.msk.bf16.mxu1 %vm2110_vm0, %v2109_v1  ;;  %1877 = vmatprep.subr.bf16.mxu1 %v2109_v1 }
 0x15e   :  { %1887 = vmatprep.mubr.msk.bf16.mxu0 %vm2110_vm0, %v2109_v1  ;;  %1884 = vmatpush3.bf16.msra.mxu0 %v2014_v30 }
 0x15f   :  { %1885 = vmatprep.subr.bf16.mxu0 %v2109_v1 }
 0x160   :  { %1878 = vmatpush3.bf16.msra.mxu1 %v2013_v26 }
 0x161   :  { %1891 = vmatprep.subr.bf16.mxu1 %v2109_v1 }
 0x162   :  { %1886 = vmatpush3.bf16.msra.mxu0 %v2016_v32 }
 0x163   :  { %1880 = vmatmul.mubr.msk.bf16.vlgmr.msra.gmra.mrb[12].mxu1 %vm52_vm1, %v502_v29  ;;  %1899 = vmatprep.subr.bf16.mxu0 %v2109_v1 }
 0x164   :  { %1895 = vmatprep.mubr.msk.bf16.mxu1 %vm2110_vm0, %v2109_v1  ;;  %1892 = vmatpush3.bf16.msra.mxu1 %v2015_v31 }
 0x165   :  { %1893 = vmatprep.subr.bf16.mxu1 %v2109_v1 }
 0x168   :  { %1894 = vmatpush3.bf16.msra.mxu1 %v2017_v33 }
 0x169   :  { %1907 = vmatprep.subr.bf16.mxu1 %v2109_v1 }
 0x22e   :  { %v437_v34 = vpop.f32.mrb[8].mxu1 }
 0x22f   :  { %v493_v35 = vpop.f32.mrb[4].mxu0  ;;  %v1865_v37 = vpop.f32.mrb[9].mxu1 }
 0x230   :  { %v494_v36 = vadd.f32 %v493_v35, %v437_v34  ;;  %v1873_v38 = vpop.f32.mrb[5].mxu0  ;;  %v440_v39 = vpop.f32.mrb[10].mxu1 }
 0x231   :  { %v496_v40 = vpop.f32.mrb[6].mxu0  ;;  %v1866_v42 = vpop.f32.mrb[11].mxu1 }
 0x232   :  { %v497_v41 = vadd.f32 %v496_v40, %v440_v39  ;;  %v1874_v43 = vpop.f32.mrb[7].mxu0 }
 0x233   :  { %v2018_v43 = vld [vmem:[%s2490_s5 + $0x20] sm:$0xff]  }
 0x236   :  { %v557_v44 = vpop.f32.mrb[12].mxu1 }
 0x237   :  { %v564_v46 = vadd.f32 %v557_v44, %v494_v36  ;;  %v1881_v47 = vpop.f32.mrb[13].mxu1 }
 0x238   :  { %v560_v48 = vpop.f32.mrb[14].mxu1 }
 0x239   :  { %v573_v49 = vadd.f32 %v1711_v45, %v564_v46  ;;  %v565_v50 = vadd.f32 %v560_v48, %v497_v41  ;;  %v1882_v51 = vpop.f32.mrb[15].mxu1 }
 0x23b   :  { %v2323_v52 = vadd.f32 %v573_v49, %v2207_v3  ;;  %v574_v53 = vadd.f32 %v1711_v45, %v565_v50  ;;  %v2019_v49 = vld [vmem:[%s2490_s5 + $0x28] sm:$0xff]  }
 0x23d   :  { %v579_v54 = vmul.f32 0.70710677, %v2323_v52  ;;  %v2327_v55 = vadd.f32 %v574_v53, %v2212_v4  ;;  %v577_v34 = vmul.f32 0.5, %v2323_v52 }
 0x23f   :  { %v581_v56 = vand.u32 2147483647, %v579_v54  ;;  %v580_v57 = vmul.f32 0.70710677, %v2327_v55  ;;  %vm621_vm6 = vcmp.ge.f32.partialorder %v579_v54, 0.0  ;;  %v578_v39 = vmul.f32 0.5, %v2327_v55 }
 0x240   :  { %v2020_v54 = vld [vmem:[%s2492_s7 + $0x10] sm:$0xff]  }
 0x241   :  { %v583_v58 = vmul.f32 0.3275911, %v581_v56  ;;  %v582_v59 = vand.u32 2147483647, %v580_v57  ;;  %v609_v63 = vsub.f32 0.0, %v581_v56  ;;  %vm622_vm7 = vcmp.ge.f32.partialorder %v580_v57, 0.0 }
 0x242   :  { %v2022_v57 = vld [vmem:[%s2492_s7 + $0x18] sm:$0xff]  }
 0x243   :  { %v585_v60 = vadd.f32 1.0, %v583_v58  ;;  %v584_v61 = vmul.f32 0.3275911, %v582_v59  ;;  %v610_v0 = vsub.f32 0.0, %v582_v59  ;;  %v611_v2 = vmul.f32 %v609_v63, %v581_v56  ;;  %v2021_v56 = vld [vmem:[%s2492_s7] sm:$0xff]   ;;  %v2023_v58 = vld [vmem:[%s2492_s7 + $0x8] sm:$0xff]  }
 0x245   :  { %2053 = vrcp.f32 %v585_v60  ;;  %v586_v62 = vadd.f32 1.0, %v584_v61  ;;  %v612_v8 = vmul.f32 %v610_v0, %v582_v59  ;;  %v613_v4 = vmul.f32 1.442695, %v611_v2 }
 0x247   :  { %2055 = vrcp.f32 %v586_v62  ;;  %v615_v13 = vmul.f32 1.442695, %v612_v8  ;;  %v1729_v8 = vld [vmem:[%s2491_s6] ss:$0 sm:$0xff] }
 0x248   :  { %2057 = vpow2.f32 %v613_v4 }
 0x249   :  { %2059 = vpow2.f32 %v615_v13 }
 0x24f   :  { %v2054_v3 = vpop.eup %2053 }
 0x250   :  { %v591_v5 = vmul.f32 1.0614054, %v2054_v3 }
 0x251   :  { %v2056_v6 = vpop.eup %2055 }
 0x252   :  { %v593_v7 = vadd.f32 -1.4531521, %v591_v5  ;;  %v592_v9 = vmul.f32 1.0614054, %v2056_v6  ;;  %v2058_v24 = vpop.eup %2057 }
 0x253   :  { %v2060_v28 = vpop.eup %2059 }
 0x254   :  { %v595_v10 = vmul.f32 %v2054_v3, %v593_v7  ;;  %v594_v11 = vadd.f32 -1.4531521, %v592_v9 }
 0x256   :  { %v597_v12 = vadd.f32 1.4214138, %v595_v10  ;;  %v596_v14 = vmul.f32 %v2056_v6, %v594_v11 }
 0x258   :  { %v599_v15 = vmul.f32 %v2054_v3, %v597_v12  ;;  %v598_v16 = vadd.f32 1.4214138, %v596_v14 }
 0x25a   :  { %v601_v17 = vadd.f32 -0.28449672, %v599_v15  ;;  %v600_v18 = vmul.f32 %v2056_v6, %v598_v16 }
 0x25c   :  { %v603_v19 = vmul.f32 %v2054_v3, %v601_v17  ;;  %v602_v20 = vadd.f32 -0.28449672, %v600_v18 }
 0x25e   :  { %v605_v21 = vadd.f32 0.2548296, %v603_v19  ;;  %v604_v22 = vmul.f32 %v2056_v6, %v602_v20 }
 0x260   :  { %v607_v23 = vmul.f32 %v2054_v3, %v605_v21  ;;  %v606_v25 = vadd.f32 0.2548296, %v604_v22 }
 0x262   :  { %v617_v26 = vmul.f32 %v2058_v24, %v607_v23  ;;  %v608_v27 = vmul.f32 %v2056_v6, %v606_v25 }
 0x264   :  { %v619_v29 = vsub.f32 1.0, %v617_v26  ;;  %v618_v30 = vmul.f32 %v2060_v28, %v608_v27 }
 0x266   :  { %v623_v31 = vsub.f32 0.0, %v619_v29  ;;  %v620_v32 = vsub.f32 1.0, %v618_v30 }
 0x268   :  { %v625_v33 = vsel %vm621_vm6, %v619_v29, %v623_v31  ;;  %v624_v36 = vsub.f32 0.0, %v620_v32 }
 0x269   :  { %v627_v35 = vadd.f32 1.0, %v625_v33 }
 0x26a   :  { %v626_v38 = vsel %vm622_vm7, %v620_v32, %v624_v36 }
 0x26b   :  { %v629_v37 = vmul.f32 %v627_v35, %v577_v34  ;;  %v628_v40 = vadd.f32 1.0, %v626_v38 }
 0x26d   :  { %631 = vst.msk [vmem:[#allocation2 + $0x8] sm:$0xff] %vm52_vm1, %v629_v37  ;;  %v630_v41 = vmul.f32 %v628_v40, %v578_v39 }
 0x26f   :  { %632 = vst.msk [vmem:[#allocation2 + $0x20] sm:$0xff] %vm52_vm1, %v630_v41 }
 0x274   :  { %v640_v42 = vld [vmem:[#allocation2 + $0x8] sm:$0xff] }
 0x275   :  { %v633_v45 = vld [vmem:[#allocation2 + $0x6] sm:$0xff] }
 0x276   :  { %v641_v44 = vld [vmem:[#allocation2 + $0x20] sm:$0xff]  ;;  %v760_v51 = vld [vmem:[#allocation2 + $0xa] sm:$0xff] }
 0x277   :  { %v634_v46 = vld [vmem:[#allocation2 + $0x1e] sm:$0xff]  ;;  %v642_v47 = vpack.c.bf16 %v641_v44, %v640_v42 }
 0x278   :  { %v635_v48 = vpack.c.bf16 %v634_v46, %v633_v45  ;;  %v761_v50 = vld [vmem:[#allocation2 + $0x22] sm:$0xff] }
 0x279   :  { %1888 = vmatmul.mubr.msk.bf16.vlgmr.msra.gmra.mrb[8].mxu0 %vm52_vm1, %v642_v47  ;;  %v762_v53 = vpack.c.bf16 %v761_v50, %v760_v51 }
 0x27a   :  { %1896 = vmatmul.mubr.msk.bf16.vlgmr.msra.gmra.mrb[16].mxu1 %vm52_vm1, %v635_v48  ;;  %1900 = vmatpush3.bf16.msra.mxu0 %v2018_v43 }
 0x27b   :  { %1903 = vmatprep.mubr.msk.bf16.mxu0 %vm2110_vm0, %v2109_v1  ;;  %1901 = vmatprep.subr.bf16.mxu0 %v2109_v1 }
 0x27c   :  { %1911 = vmatprep.mubr.msk.bf16.mxu1 %vm2110_vm0, %v2109_v1  ;;  %1908 = vmatpush3.bf16.msra.mxu1 %v2020_v54 }
 0x27d   :  { %1909 = vmatprep.subr.bf16.mxu1 %v2109_v1 }
 0x27e   :  { %1902 = vmatpush3.bf16.msra.mxu0 %v2019_v49 }
 0x27f   :  { %1915 = vmatprep.subr.bf16.mxu0 %v2109_v1 }
 0x280   :  { %1910 = vmatpush3.bf16.msra.mxu1 %v2022_v57 }
 0x281   :  { %1904 = vmatmul.mubr.msk.bf16.vlgmr.msra.gmra.mrb[12].mxu0 %vm52_vm1, %v762_v53  ;;  %1923 = vmatprep.subr.bf16.mxu1 %v2109_v1 }
 0x282   :  { %1919 = vmatprep.mubr.msk.bf16.mxu0 %vm2110_vm0, %v2109_v1  ;;  %1916 = vmatpush3.bf16.msra.mxu0 %v2021_v56 }
 0x283   :  { %1917 = vmatprep.subr.bf16.mxu0 %v2109_v1 }
 0x286   :  { %1918 = vmatpush3.bf16.msra.mxu0 %v2023_v58 }
 0x287   :  { %1931 = vmatprep.subr.bf16.mxu0 %v2109_v1 }
 0x34c   :  { %v697_v59 = vpop.f32.mrb[8].mxu0 }
 0x34d   :  { %v753_v60 = vpop.f32.mrb[16].mxu1  ;;  %v1889_v62 = vpop.f32.mrb[9].mxu0 }
 0x34e   :  { %v754_v61 = vadd.f32 %v753_v60, %v697_v59  ;;  %v1897_v63 = vpop.f32.mrb[17].mxu1  ;;  %v700_v0 = vpop.f32.mrb[10].mxu0 }
 0x34f   :  { %v756_v3 = vpop.f32.mrb[18].mxu1  ;;  %v1890_v5 = vpop.f32.mrb[11].mxu0 }
 0x350   :  { %v757_v2 = vadd.f32 %v756_v3, %v700_v0  ;;  %v1898_v6 = vpop.f32.mrb[19].mxu1 }
 0x351   :  { %v2024_v6 = vld [vmem:[%s2492_s7 + $0x20] sm:$0xff]  }
 0x354   :  { %v817_v7 = vpop.f32.mrb[12].mxu0 }
 0x355   :  { %v824_v4 = vadd.f32 %v817_v7, %v754_v61  ;;  %v1905_v9 = vpop.f32.mrb[13].mxu0 }
 0x356   :  { %v820_v10 = vpop.f32.mrb[14].mxu0 }
 0x357   :  { %v833_v11 = vadd.f32 %v1729_v8, %v824_v4  ;;  %v825_v12 = vadd.f32 %v820_v10, %v757_v2  ;;  %v1906_v13 = vpop.f32.mrb[15].mxu0 }
 0x359   :  { %v837_v14 = vmul.f32 0.70710677, %v833_v11  ;;  %v834_v15 = vadd.f32 %v1729_v8, %v825_v12  ;;  %v835_v59 = vmul.f32 0.5, %v833_v11  ;;  %v2025_v11 = vld [vmem:[%s2492_s7 + $0x28] sm:$0xff]  }
 0x35b   :  { %v839_v16 = vand.u32 2147483647, %v837_v14  ;;  %v838_v17 = vmul.f32 0.70710677, %v834_v15  ;;  %vm879_vm8 = vcmp.ge.f32.partialorder %v837_v14, 0.0  ;;  %v836_v0 = vmul.f32 0.5, %v834_v15 }
 0x35c   :  { %v2026_v15 = vld [vmem:[%s2498_s13] sm:$0xff]  }
 0x35d   :  { %v841_v18 = vmul.f32 0.3275911, %v839_v16  ;;  %v840_v19 = vand.u32 2147483647, %v838_v17  ;;  %v867_v23 = vsub.f32 0.0, %v839_v16  ;;  %vm880_vm9 = vcmp.ge.f32.partialorder %v838_v17, 0.0 }
 0x35e   :  { %v2028_v17 = vld [vmem:[%s2494_s9 + $0x10] sm:$0xff]  }
 0x35f   :  { %v843_v20 = vadd.f32 1.0, %v841_v18  ;;  %v842_v21 = vmul.f32 0.3275911, %v840_v19  ;;  %v868_v24 = vsub.f32 0.0, %v840_v19  ;;  %v869_v26 = vmul.f32 %v867_v23, %v839_v16  ;;  %v2027_v16 = vld [vmem:[%s2498_s13 + $0x8] sm:$0xff]   ;;  %v2030_v18 = vld [vmem:[%s2494_s9 + $0x18] sm:$0xff]  }
 0x361   :  { %2061 = vrcp.f32 %v843_v20  ;;  %v844_v22 = vadd.f32 1.0, %v842_v21  ;;  %v870_v30 = vmul.f32 %v868_v24, %v840_v19  ;;  %v871_v31 = vmul.f32 1.442695, %v869_v26 }
 0x363   :  { %2063 = vrcp.f32 %v844_v22  ;;  %v873_v36 = vmul.f32 1.442695, %v870_v30  ;;  %v1747_v30 = vld [vmem:[%s2493_s8] ss:$0 sm:$0xff] }
 0x364   :  { %2065 = vpow2.f32 %v871_v31 }
 0x365   :  { %2067 = vpow2.f32 %v873_v36 }
 0x36b   :  { %v2062_v25 = vpop.eup %2061 }
 0x36c   :  { %v849_v27 = vmul.f32 1.0614054, %v2062_v25 }
 0x36d   :  { %v2064_v28 = vpop.eup %2063 }
 0x36e   :  { %v851_v29 = vadd.f32 -1.4531521, %v849_v27  ;;  %v850_v32 = vmul.f32 1.0614054, %v2064_v28  ;;  %v2066_v47 = vpop.eup %2065 }
 0x36f   :  { %v2068_v51 = vpop.eup %2067 }
 0x370   :  { %v853_v33 = vmul.f32 %v2062_v25, %v851_v29  ;;  %v852_v34 = vadd.f32 -1.4531521, %v850_v32 }
 0x372   :  { %v855_v35 = vadd.f32 1.4214138, %v853_v33  ;;  %v854_v37 = vmul.f32 %v2064_v28, %v852_v34 }
 0x374   :  { %v857_v38 = vmul.f32 %v2062_v25, %v855_v35  ;;  %v856_v39 = vadd.f32 1.4214138, %v854_v37 }
 0x376   :  { %v859_v40 = vadd.f32 -0.28449672, %v857_v38  ;;  %v858_v41 = vmul.f32 %v2064_v28, %v856_v39 }
 0x378   :  { %v861_v42 = vmul.f32 %v2062_v25, %v859_v40  ;;  %v860_v43 = vadd.f32 -0.28449672, %v858_v41  ;;  %v2029_v41 = vld [vmem:[%s2494_s9] sm:$0xff]  }
 0x37a   :  { %v863_v44 = vadd.f32 0.2548296, %v861_v42  ;;  %v862_v45 = vmul.f32 %v2064_v28, %v860_v43 }
 0x37c   :  { %v865_v46 = vmul.f32 %v2062_v25, %v863_v44  ;;  %v864_v48 = vadd.f32 0.2548296, %v862_v45 }
 0x37e   :  { %v875_v49 = vmul.f32 %v2066_v47, %v865_v46  ;;  %v866_v50 = vmul.f32 %v2064_v28, %v864_v48 }
 0x380   :  { %v877_v53 = vsub.f32 1.0, %v875_v49  ;;  %v876_v54 = vmul.f32 %v2068_v51, %v866_v50 }
 0x382   :  { %v881_v56 = vsub.f32 0.0, %v877_v53  ;;  %v878_v57 = vsub.f32 1.0, %v876_v54 }
 0x384   :  { %v883_v58 = vsel %vm879_vm8, %v877_v53, %v881_v56  ;;  %v882_v61 = vsub.f32 0.0, %v878_v57 }
 0x385   :  { %v885_v60 = vadd.f32 1.0, %v883_v58 }
 0x386   :  { %v884_v63 = vsel %vm880_vm9, %v878_v57, %v882_v61 }
 0x387   :  { %v887_v62 = vmul.f32 %v885_v60, %v835_v59  ;;  %v886_v3 = vadd.f32 1.0, %v884_v63 }
 0x389   :  { %889 = vst.msk [vmem:[#allocation2 + $0x8] sm:$0xff] %vm52_vm1, %v887_v62  ;;  %v888_v2 = vmul.f32 %v886_v3, %v836_v0 }
 0x38b   :  { %890 = vst.msk [vmem:[#allocation2 + $0x20] sm:$0xff] %vm52_vm1, %v888_v2 }
 0x390   :  { %v898_v5 = vld [vmem:[#allocation2 + $0x8] sm:$0xff] }
 0x391   :  { %v891_v8 = vld [vmem:[#allocation2 + $0x6] sm:$0xff] }
 0x392   :  { %v899_v7 = vld [vmem:[#allocation2 + $0x20] sm:$0xff]  ;;  %v1018_v13 = vld [vmem:[#allocation2 + $0xa] sm:$0xff] }
 0x393   :  { %v892_v4 = vld [vmem:[#allocation2 + $0x1e] sm:$0xff]  ;;  %v900_v9 = vpack.c.bf16 %v899_v7, %v898_v5 }
 0x394   :  { %v893_v10 = vpack.c.bf16 %v892_v4, %v891_v8  ;;  %v1019_v12 = vld [vmem:[#allocation2 + $0x22] sm:$0xff] }
 0x395   :  { %1912 = vmatmul.mubr.msk.bf16.vlgmr.msra.gmra.mrb[20].mxu1 %vm52_vm1, %v900_v9  ;;  %v1020_v14 = vpack.c.bf16 %v1019_v12, %v1018_v13 }
 0x396   :  { %1920 = vmatmul.mubr.msk.bf16.vlgmr.msra.gmra.mrb[16].mxu0 %vm52_vm1, %v893_v10  ;;  %1924 = vmatpush3.bf16.msra.mxu1 %v2024_v6 }
 0x397   :  { %1927 = vmatprep.mubr.msk.bf16.mxu1 %vm2110_vm0, %v2109_v1  ;;  %1925 = vmatprep.subr.bf16.mxu1 %v2109_v1 }
 0x398   :  { %1935 = vmatprep.mubr.msk.bf16.mxu0 %vm2110_vm0, %v2109_v1  ;;  %1932 = vmatpush3.bf16.msra.mxu0 %v2026_v15 }
 0x399   :  { %1933 = vmatprep.subr.bf16.mxu0 %v2109_v1 }
 0x39a   :  { %1926 = vmatpush3.bf16.msra.mxu1 %v2025_v11 }
 0x39b   :  { %1939 = vmatprep.subr.bf16.mxu1 %v2109_v1 }
 0x39c   :  { %1934 = vmatpush3.bf16.msra.mxu0 %v2027_v16 }
 0x39d   :  { %1928 = vmatmul.mubr.msk.bf16.vlgmr.msra.gmra.mrb[24].mxu1 %vm52_vm1, %v1020_v14  ;;  %1947 = vmatprep.subr.bf16.mxu0 %v2109_v1 }
 0x39e   :  { %1943 = vmatprep.mubr.msk.bf16.mxu1 %vm2110_vm0, %v2109_v1  ;;  %1940 = vmatpush3.bf16.msra.mxu1 %v2028_v17 }
 0x39f   :  { %1941 = vmatprep.subr.bf16.mxu1 %v2109_v1 }
 0x3a2   :  { %1942 = vmatpush3.bf16.msra.mxu1 %v2030_v18 }
 0x3a3   :  { %1955 = vmatprep.subr.bf16.mxu1 %v2109_v1 }
 0x468   :  { %v955_v19 = vpop.f32.mrb[20].mxu1 }
 0x469   :  { %v1011_v20 = vpop.f32.mrb[16].mxu0  ;;  %v1913_v22 = vpop.f32.mrb[21].mxu1 }
 0x46a   :  { %v1012_v21 = vadd.f32 %v1011_v20, %v955_v19  ;;  %v1921_v23 = vpop.f32.mrb[17].mxu0  ;;  %v958_v24 = vpop.f32.mrb[22].mxu1 }
 0x46b   :  { %v1014_v25 = vpop.f32.mrb[18].mxu0  ;;  %v1914_v27 = vpop.f32.mrb[23].mxu1 }
 0x46c   :  { %v1015_v26 = vadd.f32 %v1014_v25, %v958_v24  ;;  %v1922_v28 = vpop.f32.mrb[19].mxu0 }
 0x470   :  { %v1075_v29 = vpop.f32.mrb[24].mxu1 }
 0x471   :  { %v1082_v31 = vadd.f32 %v1075_v29, %v1012_v21  ;;  %v1929_v32 = vpop.f32.mrb[25].mxu1 }
 0x472   :  { %v1078_v33 = vpop.f32.mrb[26].mxu1 }
 0x473   :  { %v1091_v34 = vadd.f32 %v1747_v30, %v1082_v31  ;;  %v1083_v35 = vadd.f32 %v1078_v33, %v1015_v26  ;;  %v1930_v36 = vpop.f32.mrb[27].mxu1  ;;  %v2032_v31 = vld [vmem:[%s2494_s9 + $0x20] sm:$0xff]  }
 0x475   :  { %v1093_v37 = vadd.f32 %v1091_v34, %v2323_v52  ;;  %v1092_v38 = vadd.f32 %v1747_v30, %v1083_v35  ;;  %v2031_v52 = vld [vmem:[%s2494_s9 + $0x8] sm:$0xff]  }
 0x477   :  { %v1165_v39 = vmul.f32 0.70710677, %v1093_v37  ;;  %v2410_v40 = vadd.f32 %v1092_v38, %v2327_v55  ;;  %v1163_v22 = vmul.f32 0.5, %v1093_v37 }
 0x479   :  { %v1167_v42 = vand.u32 2147483647, %v1165_v39  ;;  %v1095_v43 = vpack.c.bf16 %v2410_v40, %v1093_v37  ;;  %v1166_v44 = vmul.f32 0.70710677, %v2410_v40  ;;  %vm1207_vm10 = vcmp.ge.f32.partialorder %v1165_v39, 0.0  ;;  %v2033_v37 = vld [vmem:[%s2494_s9 + $0x28] sm:$0xff]  }
 0x47a   :  { %v1164_v27 = vmul.f32 0.5, %v2410_v40 }
 0x47b   :  { %v1169_v45 = vmul.f32 0.3275911, %v1167_v42  ;;  %1936 = vmatmul.mubr.msk.bf16.vlgmr.msra.gmra.mrb[20].mxu0 %vm52_vm1, %v1095_v43  ;;  %v1168_v46 = vand.u32 2147483647, %v1166_v44  ;;  %v1195_v49 = vsub.f32 0.0, %v1167_v42  ;;  %vm1208_vm11 = vcmp.ge.f32.partialorder %v1166_v44, 0.0 }
 0x47c   :  { %1948 = vmatpush3.bf16.msra.mxu0 %v2029_v41  ;;  %1951 = vmatprep.mubr.msk.bf16.mxu0 %vm2110_vm0, %v2109_v1  ;;  %v2034_v41 = vld [vmem:[%s2496_s11 + $0x8] sm:$0xff]  }
 0x47d   :  { %v1171_v55 = vadd.f32 1.0, %v1169_v45  ;;  %1949 = vmatprep.subr.bf16.mxu0 %v2109_v1  ;;  %v1170_v47 = vmul.f32 0.3275911, %v1168_v46  ;;  %v1196_v50 = vsub.f32 0.0, %v1168_v46  ;;  %v1197_v53 = vmul.f32 %v1195_v49, %v1167_v42 }
 0x47f   :  { %2069 = vrcp.f32 %v1171_v55  ;;  %v1172_v48 = vadd.f32 1.0, %v1170_v47  ;;  %v1198_v58 = vmul.f32 %v1196_v50, %v1168_v46  ;;  %v1199_v59 = vmul.f32 1.442695, %v1197_v53 }
 0x480   :  { %1950 = vmatpush3.bf16.msra.mxu0 %v2031_v52 }
 0x481   :  { %1963 = vmatprep.subr.bf16.mxu0 %v2109_v1  ;;  %2071 = vrcp.f32 %v1172_v48  ;;  %v1201_v0 = vmul.f32 1.442695, %v1198_v58 }
 0x482   :  { %2073 = vpow2.f32 %v1199_v59 }
 0x483   :  { %2075 = vpow2.f32 %v1201_v0 }
 0x489   :  { %v2070_v51 = vpop.eup %2069 }
 0x48a   :  { %v1177_v54 = vmul.f32 1.0614054, %v2070_v51 }
 0x48b   :  { %v2072_v56 = vpop.eup %2071 }
 0x48c   :  { %v1179_v57 = vadd.f32 -1.4531521, %v1177_v54  ;;  %v1178_v60 = vmul.f32 1.0614054, %v2072_v56  ;;  %v2074_v12 = vpop.eup %2073 }
 0x48d   :  { %v2076_v16 = vpop.eup %2075 }
 0x48e   :  { %v1181_v61 = vmul.f32 %v2070_v51, %v1179_v57  ;;  %v1180_v62 = vadd.f32 -1.4531521, %v1178_v60 }
 0x490   :  { %v1183_v63 = vadd.f32 1.4214138, %v1181_v61  ;;  %v1182_v3 = vmul.f32 %v2072_v56, %v1180_v62 }
 0x492   :  { %v1185_v2 = vmul.f32 %v2070_v51, %v1183_v63  ;;  %v1184_v5 = vadd.f32 1.4214138, %v1182_v3 }
 0x494   :  { %v1187_v6 = vadd.f32 -0.28449672, %v1185_v2  ;;  %v1186_v7 = vmul.f32 %v2072_v56, %v1184_v5 }
 0x496   :  { %v1189_v8 = vmul.f32 %v2070_v51, %v1187_v6  ;;  %v1188_v4 = vadd.f32 -0.28449672, %v1186_v7 }
 0x498   :  { %v1191_v9 = vadd.f32 0.2548296, %v1189_v8  ;;  %v1190_v10 = vmul.f32 %v2072_v56, %v1188_v4 }
 0x49a   :  { %v1193_v11 = vmul.f32 %v2070_v51, %v1191_v9  ;;  %v1192_v13 = vadd.f32 0.2548296, %v1190_v10  ;;  %v1769_v51 = vld [vmem:[%s2495_s10] ss:$0 sm:$0xff] }
 0x49c   :  { %v1203_v14 = vmul.f32 %v2074_v12, %v1193_v11  ;;  %v1194_v15 = vmul.f32 %v2072_v56, %v1192_v13 }
 0x49e   :  { %v1205_v17 = vsub.f32 1.0, %v1203_v14  ;;  %v1204_v18 = vmul.f32 %v2076_v16, %v1194_v15 }
 0x4a0   :  { %v1209_v19 = vsub.f32 0.0, %v1205_v17  ;;  %v1206_v20 = vsub.f32 1.0, %v1204_v18 }
 0x4a2   :  { %v1211_v21 = vsel %vm1207_vm10, %v1205_v17, %v1209_v19  ;;  %v1210_v24 = vsub.f32 0.0, %v1206_v20 }
 0x4a3   :  { %v1213_v23 = vadd.f32 1.0, %v1211_v21 }
 0x4a4   :  { %v1212_v26 = vsel %vm1208_vm11, %v1206_v20, %v1210_v24 }
 0x4a5   :  { %v1215_v25 = vmul.f32 %v1213_v23, %v1163_v22  ;;  %v1214_v28 = vadd.f32 1.0, %v1212_v26 }
 0x4a7   :  { %1217 = vst.msk [vmem:[#allocation2 + $0x8] sm:$0xff] %vm52_vm1, %v1215_v25  ;;  %v1216_v29 = vmul.f32 %v1214_v28, %v1164_v27 }
 0x4a9   :  { %1218 = vst.msk [vmem:[#allocation2 + $0x20] sm:$0xff] %vm52_vm1, %v1216_v29 }
 0x4ae   :  { %v1226_v30 = vld [vmem:[#allocation2 + $0x8] sm:$0xff] }
 0x4af   :  { %v1219_v33 = vld [vmem:[#allocation2 + $0x4] sm:$0xff]  ;;  %v1346_v39 = vld [vmem:[#allocation2 + $0xc] sm:$0xff] }
 0x4b0   :  { %v1227_v32 = vld [vmem:[#allocation2 + $0x20] sm:$0xff] }
 0x4b1   :  { %v1220_v34 = vld [vmem:[#allocation2 + $0x1c] sm:$0xff]  ;;  %v1228_v35 = vpack.c.bf16 %v1227_v32, %v1226_v30  ;;  %v1347_v38 = vld [vmem:[#allocation2 + $0x24] sm:$0xff] }
 0x4b2   :  { %v1221_v36 = vpack.c.bf16 %v1220_v34, %v1219_v33  ;;  %v1348_v40 = vpack.c.bf16 %v1347_v38, %v1346_v39 }
 0x4b3   :  { %1944 = vmatmul.mubr.msk.bf16.vlgmr.msra.gmra.mrb[28].mxu1 %vm52_vm1, %v1228_v35 }
 0x4b4   :  { %1952 = vmatmul.mubr.msk.bf16.vlgmr.msra.gmra.mrb[24].mxu0 %vm52_vm1, %v1221_v36  ;;  %1956 = vmatpush3.bf16.msra.mxu1 %v2032_v31 }
 0x4b5   :  { %1959 = vmatprep.mubr.msk.bf16.mxu1 %vm2110_vm0, %v2109_v1  ;;  %1957 = vmatprep.subr.bf16.mxu1 %v2109_v1 }
 0x4b6   :  { %1965 = vmatprep.mubr.msk.bf16.mxu0 %vm2110_vm0, %v2109_v1  ;;  %1964 = vmatpush3.bf16.msra.mxu0 %v2034_v41 }
 0x4b7   :  { %1969 = vmatprep.subr.bf16.mxu0 %v2109_v1 }
 0x4b8   :  { %1958 = vmatpush3.bf16.msra.mxu1 %v2033_v37 }
 0x4bb   :  { %1960 = vmatmul.mubr.msk.bf16.vlgmr.msra.gmra.mrb[32].mxu1 %vm52_vm1, %v1348_v40 }
 0x586   :  { %v1283_v42 = vpop.f32.mrb[28].mxu1 }
 0x587   :  { %v1339_v43 = vpop.f32.mrb[24].mxu0  ;;  %v1945_v45 = vpop.f32.mrb[29].mxu1 }
 0x588   :  { %v1340_v44 = vadd.f32 %v1339_v43, %v1283_v42  ;;  %v1953_v46 = vpop.f32.mrb[25].mxu0  ;;  %v1286_v52 = vpop.f32.mrb[30].mxu1 }
 0x589   :  { %v1342_v55 = vpop.f32.mrb[26].mxu0  ;;  %v1946_v48 = vpop.f32.mrb[31].mxu1 }
 0x58a   :  { %v1343_v47 = vadd.f32 %v1342_v55, %v1286_v52  ;;  %v1954_v49 = vpop.f32.mrb[27].mxu0  ;;  %v2035_v48 = vld [vmem:[%s2496_s11] sm:$0xff]  }
 0x58e   :  { %v1403_v50 = vpop.f32.mrb[32].mxu1 }
 0x58f   :  { %v1410_v53 = vadd.f32 %v1403_v50, %v1340_v44  ;;  %v1961_v54 = vpop.f32.mrb[33].mxu1 }
 0x590   :  { %v1406_v56 = vpop.f32.mrb[34].mxu1 }
 0x591   :  { %v1419_v57 = vadd.f32 %v1769_v51, %v1410_v53  ;;  %v1411_v58 = vadd.f32 %v1406_v56, %v1343_v47  ;;  %v1962_v59 = vpop.f32.mrb[35].mxu1  ;;  %v2036_v53 = vld [vmem:[%s2496_s11 + $0x10] sm:$0xff]   ;;  %s2111_s11 = smov [#allocation3]  }
 0x592   :  { %v1748_v59 = vld [vmem:[%s2499_s14] ss:$0 sm:$0xff]  ;;  %s1665_s20 = sshll.u32 %s2111_s11, 4  ;;  %s1666_s20 = int_to_ptr.vmem [resolvable:$true] %s1665_s20 }
 0x593   :  { %v1423_v60 = vmul.f32 0.70710677, %v1419_v57  ;;  %v1420_v61 = vadd.f32 %v1769_v51, %v1411_v58  ;;  %v1421_v40 = vmul.f32 0.5, %v1419_v57  ;;  %s2085_s14 = scalar_lea.vmem %s1666_s20, 256  ;;  %p2090_p1 = scmp.lt.s32.totalorder %s1666_s20, %s1666_s20 }
 0x594   :  { %p2086_p0 = scmp.ne.s32.totalorder %s1666_s20, %s2085_s14  ;;  %p2091_p2 = scmp.lt.s32.totalorder %s2085_s14, %s2085_s14 }
 0x595   :  { %v1425_v62 = vand.u32 2147483647, %v1423_v60  ;;  %v1424_v63 = vmul.f32 0.70710677, %v1420_v61  ;;  %vm1465_vm12 = vcmp.ge.f32.partialorder %v1423_v60, 0.0  ;;  %v1422_v45 = vmul.f32 0.5, %v1420_v61 }
 0x596   :  { %v1780_v61 = vld [vmem:[%s2497_s12] ss:$0 sm:$0xff]  ;;  %p2092_p3 = por %p2091_p2, %p2090_p1 }
 0x597   :  { %v1427_v0 = vmul.f32 0.3275911, %v1425_v62  ;;  %v1426_v3 = vand.u32 2147483647, %v1424_v63  ;;  %v1453_v7 = vsub.f32 0.0, %v1425_v62  ;;  %vm1466_vm13 = vcmp.ge.f32.partialorder %v1424_v63, 0.0 }
 0x598   :  { %p2093_p4 = pnand %p2092_p3, %p2086_p0 }
 0x599   :  { %v1429_v2 = vadd.f32 1.0, %v1427_v0  ;;  %v1428_v5 = vmul.f32 0.3275911, %v1426_v3  ;;  %v1454_v8 = vsub.f32 0.0, %v1426_v3  ;;  %v1455_v9 = vmul.f32 %v1453_v7, %v1425_v62 }
 0x59b   :  { %2077 = vrcp.f32 %v1429_v2  ;;  %v1430_v6 = vadd.f32 1.0, %v1428_v5  ;;  %v1456_v13 = vmul.f32 %v1454_v8, %v1426_v3  ;;  %v1457_v14 = vmul.f32 1.442695, %v1455_v9 }
 0x59d   :  { %2079 = vrcp.f32 %v1430_v6  ;;  %v1459_v19 = vmul.f32 1.442695, %v1456_v13 }
 0x59e   :  { %2081 = vpow2.f32 %v1457_v14 }
 0x59f   :  { %2083 = vpow2.f32 %v1459_v19 }
 0x5a5   :  { %v2078_v4 = vpop.eup %2077 }
 0x5a6   :  { %v1435_v10 = vmul.f32 1.0614054, %v2078_v4 }
 0x5a7   :  { %v2080_v11 = vpop.eup %2079 }
 0x5a8   :  { %v1437_v12 = vadd.f32 -1.4531521, %v1435_v10  ;;  %v1436_v15 = vmul.f32 1.0614054, %v2080_v11  ;;  %v2082_v30 = vpop.eup %2081 }
 0x5a9   :  { %v2084_v34 = vpop.eup %2083 }
 0x5aa   :  { %v1439_v16 = vmul.f32 %v2078_v4, %v1437_v12  ;;  %v1438_v17 = vadd.f32 -1.4531521, %v1436_v15 }
 0x5ac   :  { %v1441_v18 = vadd.f32 1.4214138, %v1439_v16  ;;  %v1440_v20 = vmul.f32 %v2080_v11, %v1438_v17 }
 0x5ae   :  { %v1443_v21 = vmul.f32 %v2078_v4, %v1441_v18  ;;  %v1442_v22 = vadd.f32 1.4214138, %v1440_v20 }
 0x5b0   :  { %v1445_v23 = vadd.f32 -0.28449672, %v1443_v21  ;;  %v1444_v24 = vmul.f32 %v2080_v11, %v1442_v22 }
 0x5b2   :  { %v1447_v25 = vmul.f32 %v2078_v4, %v1445_v23  ;;  %v1446_v26 = vadd.f32 -0.28449672, %v1444_v24 }
 0x5b4   :  { %v1449_v27 = vadd.f32 0.2548296, %v1447_v25  ;;  %v1448_v28 = vmul.f32 %v2080_v11, %v1446_v26 }
 0x5b6   :  { %v1451_v29 = vmul.f32 %v2078_v4, %v1449_v27  ;;  %v1450_v31 = vadd.f32 0.2548296, %v1448_v28 }
 0x5b8   :  { %v1461_v32 = vmul.f32 %v2082_v30, %v1451_v29  ;;  %v1452_v33 = vmul.f32 %v2080_v11, %v1450_v31 }
 0x5ba   :  { %v1463_v35 = vsub.f32 1.0, %v1461_v32  ;;  %v1462_v36 = vmul.f32 %v2084_v34, %v1452_v33 }
 0x5bc   :  { %v1467_v37 = vsub.f32 0.0, %v1463_v35  ;;  %v1464_v38 = vsub.f32 1.0, %v1462_v36 }
 0x5be   :  { %v1469_v39 = vsel %vm1465_vm12, %v1463_v35, %v1467_v37  ;;  %v1468_v42 = vsub.f32 0.0, %v1464_v38 }
 0x5bf   :  { %v1471_v41 = vadd.f32 1.0, %v1469_v39 }
 0x5c0   :  { %v1470_v44 = vsel %vm1466_vm13, %v1464_v38, %v1468_v42 }
 0x5c1   :  { %v1473_v43 = vmul.f32 %v1471_v41, %v1421_v40  ;;  %v1472_v46 = vadd.f32 1.0, %v1470_v44 }
 0x5c3   :  { %1476 = vst.msk [vmem:[#allocation2 + $0x8] sm:$0xff] %vm1475_vm14, %v1473_v43  ;;  %v1474_v52 = vmul.f32 %v1472_v46, %v1422_v45 }
 0x5c5   :  { %1477 = vst.msk [vmem:[#allocation2 + $0x20] sm:$0xff] %vm1475_vm14, %v1474_v52 }
 0x5ca   :  { %v1483_v55 = vld [vmem:[#allocation2 + $0x8] sm:$0xff] }
 0x5cb   :  { %v1478_v51 = vld [vmem:[#allocation2 + $0x4] sm:$0xff]  ;;  %v1589_v57 = vld [vmem:[#allocation2 + $0xc] sm:$0xff] }
 0x5cc   :  { %v1484_v47 = vld [vmem:[#allocation2 + $0x20] sm:$0xff] }
 0x5cd   :  { %v1485_v49 = vpack.c.bf16 %v1484_v47, %v1483_v55  ;;  %v1479_v50 = vld [vmem:[#allocation2 + $0x1c] sm:$0xff]  ;;  %v1590_v56 = vld [vmem:[#allocation2 + $0x24] sm:$0xff] }
 0x5ce   :  { %v1480_v54 = vpack.c.bf16 %v1479_v50, %v1478_v51  ;;  %v1591_v58 = vpack.c.bf16 %v1590_v56, %v1589_v57 }
 0x5cf   :  { %1966 = vmatmul.mubr.msk.bf16.vlgmr.msra.gmra.mrb[20].mxu0 %vm1475_vm14, %v1485_v49 }
 0x5d0   :  { %1970 = vmatpush3.bf16.msra.mxu0 %v2035_v48  ;;  %1971 = vmatprep.mubr.msk.bf16.mxu0 %vm2110_vm0, %v2109_v1 }
 0x5d1   :  { %1975 = vmatprep.subr.bf16.mxu0 %v2109_v1 }
 0x5db   :  { %1972 = vmatmul.mubr.msk.bf16.vlgmr.msra.gmra.mrb[20].mxu0 %vm1475_vm14, %v1480_v54 }
 0x5dc   :  { %1976 = vmatpush3.bf16.msra.mxu0 %v2036_v53  ;;  %1977 = vmatprep.mubr.msk.bf16.mxu0 %vm2110_vm0, %v2109_v1 }
 0x5e7   :  { %1978 = vmatmul.mubr.msk.bf16.vlgmr.msra.gmra.mrb[20].mxu0 %vm1475_vm14, %v1591_v58 }
 0x6ba   :  { %v1638_v60 = vpop.f32.mrb[20].mxu0 }
 0x6bb   :  { %v1981_v62 = vadd.f32 %v1748_v59, %v1638_v60  ;;  %v1979_v63 = vpop.f32.mrb[21].mxu0 }
 0x6bc   :  { %v1641_v0 = vpop.f32.mrb[22].mxu0 }
 0x6bd   :  { %v1982_v1 = vadd.f32 %v1981_v62, %v1780_v61  ;;  %v1983_v3 = vadd.f32 %v1748_v59, %v1641_v0  ;;  %v1980_v2 = vpop.f32.mrb[23].mxu0 }
 0x6bf   :  { %1658 = vst.msk [vmem:[#allocation3] sm:$0xff] %vm1475_vm14, %v1982_v1  ;;  %v1984_v5 = vadd.f32 %v1983_v3, %v1780_v61 }
 0x6c1   :  { %1659 = vst.msk [vmem:[#allocation3 + $0x8] sm:$0xff] %vm1475_vm14, %v1984_v5 }
 0x6c2   :  { %2096 = shalt.err (!%p2093_p4)
}
 0x6c3   :  { %s2097_s4 = scalar_lea.hbm %s2500_s15, 256 }
 0x6c4   :  { %p2098_p5 = scmp.ne.s32.totalorder %s2500_s15, %s2097_s4  ;;  %p2101_p6 = scmp.lt.u32.totalorder %s2097_s4, %s2500_s15 }
 0x6c6   :  { %p2103_p7 = pnand %p2101_p6, %p2098_p5 }
 0x6c8   :  { %2106 = shalt.err (!%p2103_p7)
}
 0x6c9   :  { %s2112_s5 = smov 128   ;;  %s2113_s25 = smov 8  }
 0x6ca   :  { %1671 = dma.vmem_to_hbm [thread:$0]  %s1666_s20, 256, %s2500_s15, [#allocation4], %s2112_s5, %s2112_s5, %s2113_s25  }
 0x6cb   :  { %2107 = dma.done.wait [#allocation4], 256  }
 0x6cc   :  { %2108 = vsyncadd [#allocation4], 4294967040 }
 0x6cd   :  { %1675 = vsyncpa [#allocation4], 1 }

</bundles_post_ra>
